<compile_context>
chip_gen: v6e
topology: v6e:2x2x1
jax: 0.10.0
libtpu: 0.0.40
codegen_flags: <defaults>
</compile_context>

<pallas_src>
import math
import functools
from math import comb

import numpy as np
import jax
import jax.numpy as jnp
from jax.experimental import pallas as pl
from jax.experimental.pallas import tpu as pltpu


def _round_up(x, m):
    return ((x + m - 1) // m) * m


def _fused_kgram_kernel(p_ref, pg_ref, m_ref,
                        w1_ref, b1_ref, w2_ref, b2_ref,
                        w3_ref, b3_ref, w4_ref, b4_ref,
                        o_ref, acc_ref, *, C, L):
    # p_ref  : (N, TP)   point tile, points on the 128-lane axis
    # pg_ref : (C2, TP)  packed symmetric per-point Gram rows (C2 = C*(C+1)/2)
    # m_ref  : (1, TP)   point mask (0 for masked-out / padded points)
    # w*_ref : transposed MLP weights (out, in) in mlp dtype; b*_ref: (out, 1) f32
    # o_ref  : (L, 1)    per-batch diagonal, written once at the last tile
    # acc_ref: (L, TP)   lane-dense f32 accumulator scratch
    t = pl.program_id(1)

    @pl.when(t == 0)
    def _init():
        acc_ref[...] = jnp.zeros_like(acc_ref)

    prec = jax.lax.Precision.HIGHEST if w1_ref.dtype == jnp.float32 else None
    dot = functools.partial(jnp.dot, preferred_element_type=jnp.float32,
                            precision=prec)

    # ---- diffnet MLP in transposed form (MXU); tiny weights stay resident ----
    x = p_ref[...].astype(w1_ref.dtype)
    h = jnp.maximum(dot(w1_ref[...], x) + b1_ref[...], 0.0)
    h = jnp.maximum(dot(w2_ref[...], h.astype(w2_ref.dtype)) + b2_ref[...], 0.0)
    h = jnp.maximum(dot(w3_ref[...], h.astype(w3_ref.dtype)) + b3_ref[...], 0.0)
    w = dot(w4_ref[...], h.astype(w4_ref.dtype)) + b4_ref[...]
    # w: (C*L, TP) f32 with w[c*L + i, p] == diffnet(P)[p, c, i]

    # ---- packed symmetric k-gram contraction on the VPU:
    #   dia[i] += sum_p m[p] * sum_{c<=d} G[(c,d), p] * w[c,i,p] * w[d,i,p]
    acc = None
    r = 0
    for c in range(C):
        wc = w[c * L:(c + 1) * L, :]
        for d in range(c, C):
            wd = wc if d == c else w[d * L:(d + 1) * L, :]
            g = pg_ref[r:r + 1, :]                      # (1, TP), bcast in mul
            term = g * (wc * wd)                        # (L, TP)
            acc = term if acc is None else acc + term
            r += 1
    # TODO(synk): a pl.ds(r, L, stride=0) sublane-broadcast load would move the
    # 21 row broadcasts onto the vector-load slot; kept as implicit broadcasts
    # for portability across jax versions.

    acc_ref[...] += acc * m_ref[...]                    # (1,TP) mask broadcast

    @pl.when(t == pl.num_programs(1) - 1)
    def _finalize():
        o_ref[...] = jnp.sum(acc_ref[...], axis=1, keepdims=True)


def _kgram_forward(PG, P, mask_vec, params_t, *, C, L):
    """Lane-dense repack + fused pallas_call (runs under jit so the PG repack
    — gather + symmetrize + transpose + pad — fuses into a single pass)."""
    B, P_pts, N = P.shape
    C2 = C * (C + 1) // 2
    W1t, b1t, W2t, b2t, W3t, b3t, W4t, b4t = params_t
    H = W1t.shape[0]

    # ---- point-axis tiling (points on lanes, multiple of 128) ----
    TP = min(2048, _round_up(P_pts, 128))
    T0 = _round_up(P_pts, TP) // TP
    # v7x megacore: with a single batch, split the point tiles over a leading
    # "parallel" axis so both TensorCores get work; wrapper sums the partials.
    n_split = 2 if (B == 1 and T0 >= 2) else 1
    T = -(-T0 // n_split)
    P_pad = TP * T * n_split

    # ---- symmetrized packed Gram rows, lane-dense: G_t[b, r, p] ----
    # TODO(synk): if the producer of PG can emit (B, C2, P) lane-dense directly,
    # this repack pass over PG disappears entirely.
    pairs = [(c, d) for c in range(C) for d in range(c, C)]
    idx_cd = np.array([c * C + d for c, d in pairs], np.int32)
    idx_dc = np.array([d * C + c for c, d in pairs], np.int32)
    diag_fix = np.array([0.5 if c == d else 1.0 for c, d in pairs], np.float32)

    PG_flat = PG.reshape(B, P_pts, C * C).astype(jnp.float32)
    G = (PG_flat[:, :, idx_cd] + PG_flat[:, :, idx_dc]) * diag_fix    # (B,P,C2)
    G_t = jnp.transpose(G, (0, 2, 1))                                 # (B,C2,P)
    P_t = jnp.transpose(P.astype(jnp.float32), (0, 2, 1))             # (B,N,P)
    m_t = mask_vec.astype(jnp.float32).reshape(1, P_pts)              # (1,P)

    pad = P_pad - P_pts
    if pad:
        G_t = jnp.pad(G_t, ((0, 0), (0, 0), (0, pad)))
        P_t = jnp.pad(P_t, ((0, 0), (0, 0), (0, pad)))
        m_t = jnp.pad(m_t, ((0, 0), (0, pad)))          # padded points masked out

    if n_split == 1:
        pts_idx = lambda i, t: (i, 0, t)
        msk_idx = lambda i, t: (0, t)
    else:
        pts_idx = lambda i, t: (i // n_split, 0, (i % n_split) * T + t)
        msk_idx = lambda i, t: (0, (i % n_split) * T + t)
    full = lambda shape: pl.BlockSpec(shape, lambda i, t: (0, 0))

    flops = B * P_pad * (2 * (N * H + 2 * H * H + H * C * L) + (3 * C2 + 1) * L)
    bytes_accessed = int(G_t.size * G_t.dtype.itemsize
                         + P_t.size * P_t.dtype.itemsize
                         + m_t.size * 4 + B * n_split * L * 4)

    out = pl.pallas_call(
        functools.partial(_fused_kgram_kernel, C=C, L=L),
        grid=(B * n_split, T),
        in_specs=[
            pl.BlockSpec((None, N, TP), pts_idx),
            pl.BlockSpec((None, C2, TP), pts_idx),
            pl.BlockSpec((1, TP), msk_idx),
            full((H, N)), full((H, 1)),
            full((H, H)), full((H, 1)),
            full((H, H)), full((H, 1)),
            full((C * L, H)), full((C * L, 1)),
        ],
        out_specs=pl.BlockSpec((None, L, 1), lambda i, t: (i, 0, 0)),
        out_shape=jax.ShapeDtypeStruct((B * n_split, L, 1), jnp.float32),
        scratch_shapes=[pltpu.VMEM((L, TP), jnp.float32)],
        compiler_params=pltpu.CompilerParams(
            dimension_semantics=("parallel", "arbitrary"),
            vmem_limit_bytes=32 * 1024 * 1024),
        cost_estimate=pl.CostEstimate(flops=flops, transcendentals=0,
                                      bytes_accessed=bytes_accessed),
    )(P_t, G_t, m_t, W1t, b1t, W2t, b2t, W3t, b3t, W4t, b4t)

    dia = out[:, :, 0]                                   # (B*n_split, L)
    if n_split > 1:
        dia = dia.reshape(B, n_split, L).sum(axis=1)
    return dia                                           # (B, L)


class KgramsPallas:
    """Pallas/TPU port of Kgrams.forward (diffnet MLP + k-gram diagonal)."""

    def __init__(self, l, n, k, hidden_dim, n_classes, key,
                 mlp_dtype=jnp.bfloat16):
        self.l = l
        self.in_dim = n
        self.combination = comb(n, k)
        self.out_dim = self.combination * l
        self.classhead_input_size = l * l
        self.mlp_dtype = mlp_dtype

        dims = [(n, hidden_dim),
                (hidden_dim, hidden_dim),
                (hidden_dim, hidden_dim),
                (hidden_dim, self.out_dim)]
        self.params = []                 # f32 master copies (nn.Linear layout)
        for fi, fo in dims:
            key, k1, k2 = jax.random.split(key, 3)
            bound = 1.0 / math.sqrt(fi)
            W = jax.random.uniform(k1, (fi, fo), jnp.float32, -bound, bound)
            b = jax.random.uniform(k2, (1, fo), jnp.float32, -bound, bound)
            self.params += [W, b]
        # Kernel-side copies: W^T (out, in) in mlp_dtype (bf16 on the MXU with
        # f32 accumulation by default); biases (out, 1) kept in f32.
        params_t = []
        for i in range(0, 8, 2):
            params_t.append(self.params[i].T.astype(mlp_dtype))
            params_t.append(self.params[i + 1].T.astype(jnp.float32))
        self.params_t = tuple(params_t)

        self._fwd = jax.jit(functools.partial(
            _kgram_forward, C=self.combination, L=self.l))
        # TODO(synk): classhead (Flatten -> Linear -> ReLU -> Linear) exists in
        # the reference module but is never used by forward(); omitted here.

    def forward(self, PG, P, mask=None):
        B, P_pts, _ = P.shape
        if P_pts == 0:
            # Mirrors the reference early return exactly (shape (B, l, l)).
            return jnp.zeros((B, self.l, self.l), jnp.float32)
        if mask is None:
            mask_vec = jnp.ones((P_pts,), jnp.float32)
        else:
            # Reference keeps points where mask[-1] is True; the diagonal is
            # linear in PG per point, so zeroing masked points in-kernel is
            # exact (including the all-False case, which also yields zeros).
            mask_vec = jnp.asarray(mask)[-1].astype(jnp.float32)
        return self._fwd(PG, P, mask_vec, self.params_t)


def _reference_forward(params, PG, P, mask=None, mlp_dtype=jnp.float32, *, C, L):
    """Plain-JAX transcription of the PyTorch module's forward()."""
    W1, b1, W2, b2, W3, b3, W4, b4 = params
    prec = jax.lax.Precision.HIGHEST if mlp_dtype == jnp.float32 else None

    def lin(x, W, b):
        return jnp.dot(x.astype(mlp_dtype), W.astype(mlp_dtype),
                       preferred_element_type=jnp.float32, precision=prec) + b

    h = jnp.maximum(lin(P, W1, b1), 0.0)
    h = jnp.maximum(lin(h, W2, b2), 0.0)
    h = jnp.maximum(lin(h, W3, b3), 0.0)
    out = lin(h, W4, b4)
    B, Pn, _ = P.shape
    w = out.reshape(B, Pn, C, L)
    kgram = jnp.einsum('bpcl,bpcd,bpdj->bplj', w, PG.astype(jnp.float32), w,
                       precision=jax.lax.Precision.HIGHEST)
    if mask is not None:
        m = np.asarray(mask)
        if not m.any():
            kgram = jnp.zeros_like(kgram)
        else:
            keep = np.nonzero(m[-1])[0]
            kgram = kgram[:, keep, :, :]
    pcreps = jnp.sum(kgram, axis=1)
    return jnp.diagonal(pcreps, axis1=-1, axis2=-2)


if __name__ == "__main__":
    l, n, k, hidden_dim, n_classes = 8, 4, 2, 32, 5      # comb(4, 2) = 6
    key = jax.random.PRNGKey(0)
    key, kp1, kg1, kp2, kg2, km = jax.random.split(key, 6)

    # Same param key -> identical f32 master weights for both precision modes.
    model_bf16 = KgramsPallas(l, n, k, hidden_dim, n_classes, km)   # bf16 MXU
    model_f32 = KgramsPallas(l, n, k, hidden_dim, n_classes, km,
                             mlp_dtype=jnp.float32)
    C = model_bf16.combination

    # case 1: tiny batch, no mask
    B1, Pp1 = 2, 8
    P1 = jax.random.normal(kp1, (B1, Pp1, n), jnp.float32)
    PG1 = jax.random.normal(kg1, (B1, Pp1, C, C), jnp.float32)

    # case 2: single batch with many points (exercises the 2-way point-tile
    # split used for v7x megacore) plus a partial point mask
    B2, Pp2 = 1, 2500
    P2 = jax.random.normal(kp2, (B2, Pp2, n), jnp.float32)
    PG2 = jax.random.normal(kg2, (B2, Pp2, C, C), jnp.float32)
    mask2 = (jnp.arange(Pp2) % 3 != 0).reshape(1, Pp2)

    cases = [(PG1, P1, None), (PG2, P2, mask2)]
    for model, tol in ((model_f32, 1e-3), (model_bf16, 1e-2)):
        for PG, P, mask in cases:
            out = jax.block_until_ready(model.forward(PG, P, mask))
            ref = _reference_forward(model.params, PG, P, mask,
                                     mlp_dtype=model.mlp_dtype, C=C, L=l)
            assert out.shape == (P.shape[0], l), out.shape
            err = float(jnp.max(jnp.abs(out - ref)))
            assert jnp.allclose(out, ref, atol=tol, rtol=tol), \
                (str(model.mlp_dtype), err, tol)

    # empty point set: matches the reference's (B, l, l) early-return shape
    assert model_bf16.forward(PG1[:, :0], P1[:, :0]).shape == (B1, l, l)

    print("KERNEL_OK")
</pallas_src>

<mosaic_0001>
module attributes {stable_mosaic.version = 11 : i64} {
  func.func @_fused_kgram_kernel(%arg0: i32, %arg1: i32, %arg2: memref<1x4x128xf32, #tpu.memory_space<vmem>>, %arg3: memref<1x21x128xf32, #tpu.memory_space<vmem>>, %arg4: memref<1x128xf32, #tpu.memory_space<vmem>>, %arg5: memref<32x4xf32, #tpu.memory_space<vmem>>, %arg6: memref<32x1xf32, #tpu.memory_space<vmem>>, %arg7: memref<32x32xf32, #tpu.memory_space<vmem>>, %arg8: memref<32x1xf32, #tpu.memory_space<vmem>>, %arg9: memref<32x32xf32, #tpu.memory_space<vmem>>, %arg10: memref<32x1xf32, #tpu.memory_space<vmem>>, %arg11: memref<48x32xf32, #tpu.memory_space<vmem>>, %arg12: memref<48x1xf32, #tpu.memory_space<vmem>>, %arg13: memref<1x8x1xf32, #tpu.memory_space<vmem>>, %arg14: memref<8x128xf32, #tpu.memory_space<vmem>>) attributes {dimension_semantics = [#tpu.dimension_semantics<parallel>, #tpu.dimension_semantics<arbitrary>], iteration_bounds = array<i64: 2, 1>, scalar_prefetch = 0 : i64, scratch_operands = 1 : i64, tpu.core_type = #tpu.core_type<tc>, window_params = [{transform_indices = @transform_0, window_bounds = array<i64: 1, 4, 128>}, {transform_indices = @transform_1, window_bounds = array<i64: 1, 21, 128>}, {transform_indices = @transform_2, window_bounds = array<i64: 1, 128>}, {pipeline_mode = #tpu.pipeline_mode<synchronous>, transform_indices = @transform_3, window_bounds = array<i64: 32, 4>}, {pipeline_mode = #tpu.pipeline_mode<synchronous>, transform_indices = @transform_4, window_bounds = array<i64: 32, 1>}, {pipeline_mode = #tpu.pipeline_mode<synchronous>, transform_indices = @transform_5, window_bounds = array<i64: 32, 32>}, {pipeline_mode = #tpu.pipeline_mode<synchronous>, transform_indices = @transform_6, window_bounds = array<i64: 32, 1>}, {pipeline_mode = #tpu.pipeline_mode<synchronous>, transform_indices = @transform_7, window_bounds = array<i64: 32, 32>}, {pipeline_mode = #tpu.pipeline_mode<synchronous>, transform_indices = @transform_8, window_bounds = array<i64: 32, 1>}, {pipeline_mode = #tpu.pipeline_mode<synchronous>, transform_indices = @transform_9, window_bounds = array<i64: 48, 32>}, {pipeline_mode = #tpu.pipeline_mode<synchronous>, transform_indices = @transform_10, window_bounds = array<i64: 48, 1>}, {transform_indices = @transform_11, window_bounds = array<i64: 1, 8, 1>}]} {
    %c0_i32 = arith.constant 0 : i32
    %0 = arith.cmpi eq, %arg1, %c0_i32 : i32
    %1 = arith.extui %0 : i1 to i32
    %c0_i32_0 = arith.constant 0 : i32
    %2 = arith.cmpi ne, %1, %c0_i32_0 : i32
    scf.if %2 {
      %cst_76 = arith.constant 0.000000e+00 : f32
      %186 = vector.broadcast %cst_76 : f32 to vector<8x128xf32>
      %c0_77 = arith.constant 0 : index
      %c0_78 = arith.constant 0 : index
      %187 = vector.load %arg14[%c0_77, %c0_78] : memref<8x128xf32, #tpu.memory_space<vmem>>, vector<8x128xf32>
      tpu.vector_store %arg14[%c0_77, %c0_78], %186 {strides = array<i32>} : memref<8x128xf32, #tpu.memory_space<vmem>>, vector<8x128xf32>,
    } else {
    }
    %c0 = arith.constant 0 : index
    %c0_1 = arith.constant 0 : index
    %c0_2 = arith.constant 0 : index
    %3 = vector.load %arg2[%c0, %c0_1, %c0_2] : memref<1x4x128xf32, #tpu.memory_space<vmem>>, vector<1x4x128xf32>
    %4 = vector.shape_cast %3 : vector<1x4x128xf32> to vector<4x128xf32>
    %c0_3 = arith.constant 0 : index
    %c0_4 = arith.constant 0 : index
    %5 = vector.load %arg5[%c0_3, %c0_4] : memref<32x4xf32, #tpu.memory_space<vmem>>, vector<32x4xf32>
    %cst = arith.constant dense<0.000000e+00> : vector<32x128xf32>
    %6 = tpu.matmul %5, %4, %cst {dimension_numbers = #tpu.dot_dimension_numbers<[1], [0], [0], [1], [0, 0, 1, 1], [], []>, precision = #tpu.contract_precision<fp32>} : vector<32x4xf32>, vector<4x128xf32>, vector<32x128xf32> -> vector<32x128xf32>
    %c0_5 = arith.constant 0 : index
    %c0_6 = arith.constant 0 : index
    %7 = vector.load %arg6[%c0_5, %c0_6] : memref<32x1xf32, #tpu.memory_space<vmem>>, vector<32x1xf32>
    %8 = vector.broadcast %7 : vector<32x1xf32> to vector<32x128xf32>
    %9 = arith.addf %6, %8 : vector<32x128xf32>
    %cst_7 = arith.constant 0.000000e+00 : f32
    %10 = vector.broadcast %cst_7 : f32 to vector<32x128xf32>
    %11 = arith.maximumf %9, %10 : vector<32x128xf32>
    %c0_8 = arith.constant 0 : index
    %c0_9 = arith.constant 0 : index
    %12 = vector.load %arg7[%c0_8, %c0_9] : memref<32x32xf32, #tpu.memory_space<vmem>>, vector<32x32xf32>
    %cst_10 = arith.constant dense<0.000000e+00> : vector<32x128xf32>
    %13 = tpu.matmul %12, %11, %cst_10 {dimension_numbers = #tpu.dot_dimension_numbers<[1], [0], [0], [1], [0, 0, 1, 1], [], []>, precision = #tpu.contract_precision<fp32>} : vector<32x32xf32>, vector<32x128xf32>, vector<32x128xf32> -> vector<32x128xf32>
    %c0_11 = arith.constant 0 : index
    %c0_12 = arith.constant 0 : index
    %14 = vector.load %arg8[%c0_11, %c0_12] : memref<32x1xf32, #tpu.memory_space<vmem>>, vector<32x1xf32>
    %15 = vector.broadcast %14 : vector<32x1xf32> to vector<32x128xf32>
    %16 = arith.addf %13, %15 : vector<32x128xf32>
    %cst_13 = arith.constant 0.000000e+00 : f32
    %17 = vector.broadcast %cst_13 : f32 to vector<32x128xf32>
    %18 = arith.maximumf %16, %17 : vector<32x128xf32>
    %c0_14 = arith.constant 0 : index
    %c0_15 = arith.constant 0 : index
    %19 = vector.load %arg9[%c0_14, %c0_15] : memref<32x32xf32, #tpu.memory_space<vmem>>, vector<32x32xf32>
    %cst_16 = arith.constant dense<0.000000e+00> : vector<32x128xf32>
    %20 = tpu.matmul %19, %18, %cst_16 {dimension_numbers = #tpu.dot_dimension_numbers<[1], [0], [0], [1], [0, 0, 1, 1], [], []>, precision = #tpu.contract_precision<fp32>} : vector<32x32xf32>, vector<32x128xf32>, vector<32x128xf32> -> vector<32x128xf32>
    %c0_17 = arith.constant 0 : index
    %c0_18 = arith.constant 0 : index
    %21 = vector.load %arg10[%c0_17, %c0_18] : memref<32x1xf32, #tpu.memory_space<vmem>>, vector<32x1xf32>
    %22 = vector.broadcast %21 : vector<32x1xf32> to vector<32x128xf32>
    %23 = arith.addf %20, %22 : vector<32x128xf32>
    %cst_19 = arith.constant 0.000000e+00 : f32
    %24 = vector.broadcast %cst_19 : f32 to vector<32x128xf32>
    %25 = arith.maximumf %23, %24 : vector<32x128xf32>
    %c0_20 = arith.constant 0 : index
    %c0_21 = arith.constant 0 : index
    %26 = vector.load %arg11[%c0_20, %c0_21] : memref<48x32xf32, #tpu.memory_space<vmem>>, vector<48x32xf32>
    %cst_22 = arith.constant dense<0.000000e+00> : vector<48x128xf32>
    %27 = tpu.matmul %26, %25, %cst_22 {dimension_numbers = #tpu.dot_dimension_numbers<[1], [0], [0], [1], [0, 0, 1, 1], [], []>, precision = #tpu.contract_precision<fp32>} : vector<48x32xf32>, vector<32x128xf32>, vector<48x128xf32> -> vector<48x128xf32>
    %c0_23 = arith.constant 0 : index
    %c0_24 = arith.constant 0 : index
    %28 = vector.load %arg12[%c0_23, %c0_24] : memref<48x1xf32, #tpu.memory_space<vmem>>, vector<48x1xf32>
    %29 = vector.broadcast %28 : vector<48x1xf32> to vector<48x128xf32>
    %30 = arith.addf %27, %29 : vector<48x128xf32>
    %31 = vector.extract_strided_slice %30 {offsets = [0, 0], sizes = [8, 128], strides = [1, 1]} : vector<48x128xf32> to vector<8x128xf32>
    %c0_25 = arith.constant 0 : index
    %c0_26 = arith.constant 0 : index
    %c0_27 = arith.constant 0 : index
    %32 = vector.load %arg3[%c0_25, %c0_26, %c0_27] : memref<1x21x128xf32, #tpu.memory_space<vmem>>, vector<1x1x128xf32>
    %33 = vector.shape_cast %32 : vector<1x1x128xf32> to vector<1x128xf32>
    %34 = arith.mulf %31, %31 : vector<8x128xf32>
    %35 = vector.broadcast %33 : vector<1x128xf32> to vector<8x128xf32>
    %36 = arith.mulf %35, %34 : vector<8x128xf32>
    %37 = vector.extract_strided_slice %30 {offsets = [8, 0], sizes = [8, 128], strides = [1, 1]} : vector<48x128xf32> to vector<8x128xf32>
    %c0_28 = arith.constant 0 : index
    %c1 = arith.constant 1 : index
    %c0_29 = arith.constant 0 : index
    %38 = vector.load %arg3[%c0_28, %c1, %c0_29] : memref<1x21x128xf32, #tpu.memory_space<vmem>>, vector<1x1x128xf32>
    %39 = vector.shape_cast %38 : vector<1x1x128xf32> to vector<1x128xf32>
    %40 = arith.mulf %31, %37 : vector<8x128xf32>
    %41 = vector.broadcast %39 : vector<1x128xf32> to vector<8x128xf32>
    %42 = arith.mulf %41, %40 : vector<8x128xf32>
    %43 = arith.addf %36, %42 : vector<8x128xf32>
    %44 = vector.extract_strided_slice %30 {offsets = [16, 0], sizes = [8, 128], strides = [1, 1]} : vector<48x128xf32> to vector<8x128xf32>
    %c0_30 = arith.constant 0 : index
    %c2 = arith.constant 2 : index
    %c0_31 = arith.constant 0 : index
    %45 = vector.load %arg3[%c0_30, %c2, %c0_31] : memref<1x21x128xf32, #tpu.memory_space<vmem>>, vector<1x1x128xf32>
    %46 = vector.shape_cast %45 : vector<1x1x128xf32> to vector<1x128xf32>
    %47 = arith.mulf %31, %44 : vector<8x128xf32>
    %48 = vector.broadcast %46 : vector<1x128xf32> to vector<8x128xf32>
    %49 = arith.mulf %48, %47 : vector<8x128xf32>
    %50 = arith.addf %43, %49 : vector<8x128xf32>
    %51 = vector.extract_strided_slice %30 {offsets = [24, 0], sizes = [8, 128], strides = [1, 1]} : vector<48x128xf32> to vector<8x128xf32>
    %c0_32 = arith.constant 0 : index
    %c3 = arith.constant 3 : index
    %c0_33 = arith.constant 0 : index
    %52 = vector.load %arg3[%c0_32, %c3, %c0_33] : memref<1x21x128xf32, #tpu.memory_space<vmem>>, vector<1x1x128xf32>
    %53 = vector.shape_cast %52 : vector<1x1x128xf32> to vector<1x128xf32>
    %54 = arith.mulf %31, %51 : vector<8x128xf32>
    %55 = vector.broadcast %53 : vector<1x128xf32> to vector<8x128xf32>
    %56 = arith.mulf %55, %54 : vector<8x128xf32>
    %57 = arith.addf %50, %56 : vector<8x128xf32>
    %58 = vector.extract_strided_slice %30 {offsets = [32, 0], sizes = [8, 128], strides = [1, 1]} : vector<48x128xf32> to vector<8x128xf32>
    %c0_34 = arith.constant 0 : index
    %c4 = arith.constant 4 : index
    %c0_35 = arith.constant 0 : index
    %59 = vector.load %arg3[%c0_34, %c4, %c0_35] : memref<1x21x128xf32, #tpu.memory_space<vmem>>, vector<1x1x128xf32>
    %60 = vector.shape_cast %59 : vector<1x1x128xf32> to vector<1x128xf32>
    %61 = arith.mulf %31, %58 : vector<8x128xf32>
    %62 = vector.broadcast %60 : vector<1x128xf32> to vector<8x128xf32>
    %63 = arith.mulf %62, %61 : vector<8x128xf32>
    %64 = arith.addf %57, %63 : vector<8x128xf32>
    %65 = vector.extract_strided_slice %30 {offsets = [40, 0], sizes = [8, 128], strides = [1, 1]} : vector<48x128xf32> to vector<8x128xf32>
    %c0_36 = arith.constant 0 : index
    %c5 = arith.constant 5 : index
    %c0_37 = arith.constant 0 : index
    %66 = vector.load %arg3[%c0_36, %c5, %c0_37] : memref<1x21x128xf32, #tpu.memory_space<vmem>>, vector<1x1x128xf32>
    %67 = vector.shape_cast %66 : vector<1x1x128xf32> to vector<1x128xf32>
    %68 = arith.mulf %31, %65 : vector<8x128xf32>
    %69 = vector.broadcast %67 : vector<1x128xf32> to vector<8x128xf32>
    %70 = arith.mulf %69, %68 : vector<8x128xf32>
    %71 = arith.addf %64, %70 : vector<8x128xf32>
    %72 = vector.extract_strided_slice %30 {offsets = [8, 0], sizes = [8, 128], strides = [1, 1]} : vector<48x128xf32> to vector<8x128xf32>
    %c0_38 = arith.constant 0 : index
    %c6 = arith.constant 6 : index
    %c0_39 = arith.constant 0 : index
    %73 = vector.load %arg3[%c0_38, %c6, %c0_39] : memref<1x21x128xf32, #tpu.memory_space<vmem>>, vector<1x1x128xf32>
    %74 = vector.shape_cast %73 : vector<1x1x128xf32> to vector<1x128xf32>
    %75 = arith.mulf %72, %72 : vector<8x128xf32>
    %76 = vector.broadcast %74 : vector<1x128xf32> to vector<8x128xf32>
    %77 = arith.mulf %76, %75 : vector<8x128xf32>
    %78 = arith.addf %71, %77 : vector<8x128xf32>
    %79 = vector.extract_strided_slice %30 {offsets = [16, 0], sizes = [8, 128], strides = [1, 1]} : vector<48x128xf32> to vector<8x128xf32>
    %c0_40 = arith.constant 0 : index
    %c7 = arith.constant 7 : index
    %c0_41 = arith.constant 0 : index
    %80 = vector.load %arg3[%c0_40, %c7, %c0_41] : memref<1x21x128xf32, #tpu.memory_space<vmem>>, vector<1x1x128xf32>
    %81 = vector.shape_cast %80 : vector<1x1x128xf32> to vector<1x128xf32>
    %82 = arith.mulf %72, %79 : vector<8x128xf32>
    %83 = vector.broadcast %81 : vector<1x128xf32> to vector<8x128xf32>
    %84 = arith.mulf %83, %82 : vector<8x128xf32>
    %85 = arith.addf %78, %84 : vector<8x128xf32>
    %86 = vector.extract_strided_slice %30 {offsets = [24, 0], sizes = [8, 128], strides = [1, 1]} : vector<48x128xf32> to vector<8x128xf32>
    %c0_42 = arith.constant 0 : index
    %c8 = arith.constant 8 : index
    %c0_43 = arith.constant 0 : index
    %87 = vector.load %arg3[%c0_42, %c8, %c0_43] : memref<1x21x128xf32, #tpu.memory_space<vmem>>, vector<1x1x128xf32>
    %88 = vector.shape_cast %87 : vector<1x1x128xf32> to vector<1x128xf32>
    %89 = arith.mulf %72, %86 : vector<8x128xf32>
    %90 = vector.broadcast %88 : vector<1x128xf32> to vector<8x128xf32>
    %91 = arith.mulf %90, %89 : vector<8x128xf32>
    %92 = arith.addf %85, %91 : vector<8x128xf32>
    %93 = vector.extract_strided_slice %30 {offsets = [32, 0], sizes = [8, 128], strides = [1, 1]} : vector<48x128xf32> to vector<8x128xf32>
    %c0_44 = arith.constant 0 : index
    %c9 = arith.constant 9 : index
    %c0_45 = arith.constant 0 : index
    %94 = vector.load %arg3[%c0_44, %c9, %c0_45] : memref<1x21x128xf32, #tpu.memory_space<vmem>>, vector<1x1x128xf32>
    %95 = vector.shape_cast %94 : vector<1x1x128xf32> to vector<1x128xf32>
    %96 = arith.mulf %72, %93 : vector<8x128xf32>
    %97 = vector.broadcast %95 : vector<1x128xf32> to vector<8x128xf32>
    %98 = arith.mulf %97, %96 : vector<8x128xf32>
    %99 = arith.addf %92, %98 : vector<8x128xf32>
    %100 = vector.extract_strided_slice %30 {offsets = [40, 0], sizes = [8, 128], strides = [1, 1]} : vector<48x128xf32> to vector<8x128xf32>
    %c0_46 = arith.constant 0 : index
    %c10 = arith.constant 10 : index
    %c0_47 = arith.constant 0 : index
    %101 = vector.load %arg3[%c0_46, %c10, %c0_47] : memref<1x21x128xf32, #tpu.memory_space<vmem>>, vector<1x1x128xf32>
    %102 = vector.shape_cast %101 : vector<1x1x128xf32> to vector<1x128xf32>
    %103 = arith.mulf %72, %100 : vector<8x128xf32>
    %104 = vector.broadcast %102 : vector<1x128xf32> to vector<8x128xf32>
    %105 = arith.mulf %104, %103 : vector<8x128xf32>
    %106 = arith.addf %99, %105 : vector<8x128xf32>
    %107 = vector.extract_strided_slice %30 {offsets = [16, 0], sizes = [8, 128], strides = [1, 1]} : vector<48x128xf32> to vector<8x128xf32>
    %c0_48 = arith.constant 0 : index
    %c11 = arith.constant 11 : index
    %c0_49 = arith.constant 0 : index
    %108 = vector.load %arg3[%c0_48, %c11, %c0_49] : memref<1x21x128xf32, #tpu.memory_space<vmem>>, vector<1x1x128xf32>
    %109 = vector.shape_cast %108 : vector<1x1x128xf32> to vector<1x128xf32>
    %110 = arith.mulf %107, %107 : vector<8x128xf32>
    %111 = vector.broadcast %109 : vector<1x128xf32> to vector<8x128xf32>
    %112 = arith.mulf %111, %110 : vector<8x128xf32>
    %113 = arith.addf %106, %112 : vector<8x128xf32>
    %114 = vector.extract_strided_slice %30 {offsets = [24, 0], sizes = [8, 128], strides = [1, 1]} : vector<48x128xf32> to vector<8x128xf32>
    %c0_50 = arith.constant 0 : index
    %c12 = arith.constant 12 : index
    %c0_51 = arith.constant 0 : index
    %115 = vector.load %arg3[%c0_50, %c12, %c0_51] : memref<1x21x128xf32, #tpu.memory_space<vmem>>, vector<1x1x128xf32>
    %116 = vector.shape_cast %115 : vector<1x1x128xf32> to vector<1x128xf32>
    %117 = arith.mulf %107, %114 : vector<8x128xf32>
    %118 = vector.broadcast %116 : vector<1x128xf32> to vector<8x128xf32>
    %119 = arith.mulf %118, %117 : vector<8x128xf32>
    %120 = arith.addf %113, %119 : vector<8x128xf32>
    %121 = vector.extract_strided_slice %30 {offsets = [32, 0], sizes = [8, 128], strides = [1, 1]} : vector<48x128xf32> to vector<8x128xf32>
    %c0_52 = arith.constant 0 : index
    %c13 = arith.constant 13 : index
    %c0_53 = arith.constant 0 : index
    %122 = vector.load %arg3[%c0_52, %c13, %c0_53] : memref<1x21x128xf32, #tpu.memory_space<vmem>>, vector<1x1x128xf32>
    %123 = vector.shape_cast %122 : vector<1x1x128xf32> to vector<1x128xf32>
    %124 = arith.mulf %107, %121 : vector<8x128xf32>
    %125 = vector.broadcast %123 : vector<1x128xf32> to vector<8x128xf32>
    %126 = arith.mulf %125, %124 : vector<8x128xf32>
    %127 = arith.addf %120, %126 : vector<8x128xf32>
    %128 = vector.extract_strided_slice %30 {offsets = [40, 0], sizes = [8, 128], strides = [1, 1]} : vector<48x128xf32> to vector<8x128xf32>
    %c0_54 = arith.constant 0 : index
    %c14 = arith.constant 14 : index
    %c0_55 = arith.constant 0 : index
    %129 = vector.load %arg3[%c0_54, %c14, %c0_55] : memref<1x21x128xf32, #tpu.memory_space<vmem>>, vector<1x1x128xf32>
    %130 = vector.shape_cast %129 : vector<1x1x128xf32> to vector<1x128xf32>
    %131 = arith.mulf %107, %128 : vector<8x128xf32>
    %132 = vector.broadcast %130 : vector<1x128xf32> to vector<8x128xf32>
    %133 = arith.mulf %132, %131 : vector<8x128xf32>
    %134 = arith.addf %127, %133 : vector<8x128xf32>
    %135 = vector.extract_strided_slice %30 {offsets = [24, 0], sizes = [8, 128], strides = [1, 1]} : vector<48x128xf32> to vector<8x128xf32>
    %c0_56 = arith.constant 0 : index
    %c15 = arith.constant 15 : index
    %c0_57 = arith.constant 0 : index
    %136 = vector.load %arg3[%c0_56, %c15, %c0_57] : memref<1x21x128xf32, #tpu.memory_space<vmem>>, vector<1x1x128xf32>
    %137 = vector.shape_cast %136 : vector<1x1x128xf32> to vector<1x128xf32>
    %138 = arith.mulf %135, %135 : vector<8x128xf32>
    %139 = vector.broadcast %137 : vector<1x128xf32> to vector<8x128xf32>
    %140 = arith.mulf %139, %138 : vector<8x128xf32>
    %141 = arith.addf %134, %140 : vector<8x128xf32>
    %142 = vector.extract_strided_slice %30 {offsets = [32, 0], sizes = [8, 128], strides = [1, 1]} : vector<48x128xf32> to vector<8x128xf32>
    %c0_58 = arith.constant 0 : index
    %c16 = arith.constant 16 : index
    %c0_59 = arith.constant 0 : index
    %143 = vector.load %arg3[%c0_58, %c16, %c0_59] : memref<1x21x128xf32, #tpu.memory_space<vmem>>, vector<1x1x128xf32>
    %144 = vector.shape_cast %143 : vector<1x1x128xf32> to vector<1x128xf32>
    %145 = arith.mulf %135, %142 : vector<8x128xf32>
    %146 = vector.broadcast %144 : vector<1x128xf32> to vector<8x128xf32>
    %147 = arith.mulf %146, %145 : vector<8x128xf32>
    %148 = arith.addf %141, %147 : vector<8x128xf32>
    %149 = vector.extract_strided_slice %30 {offsets = [40, 0], sizes = [8, 128], strides = [1, 1]} : vector<48x128xf32> to vector<8x128xf32>
    %c0_60 = arith.constant 0 : index
    %c17 = arith.constant 17 : index
    %c0_61 = arith.constant 0 : index
    %150 = vector.load %arg3[%c0_60, %c17, %c0_61] : memref<1x21x128xf32, #tpu.memory_space<vmem>>, vector<1x1x128xf32>
    %151 = vector.shape_cast %150 : vector<1x1x128xf32> to vector<1x128xf32>
    %152 = arith.mulf %135, %149 : vector<8x128xf32>
    %153 = vector.broadcast %151 : vector<1x128xf32> to vector<8x128xf32>
    %154 = arith.mulf %153, %152 : vector<8x128xf32>
    %155 = arith.addf %148, %154 : vector<8x128xf32>
    %156 = vector.extract_strided_slice %30 {offsets = [32, 0], sizes = [8, 128], strides = [1, 1]} : vector<48x128xf32> to vector<8x128xf32>
    %c0_62 = arith.constant 0 : index
    %c18 = arith.constant 18 : index
    %c0_63 = arith.constant 0 : index
    %157 = vector.load %arg3[%c0_62, %c18, %c0_63] : memref<1x21x128xf32, #tpu.memory_space<vmem>>, vector<1x1x128xf32>
    %158 = vector.shape_cast %157 : vector<1x1x128xf32> to vector<1x128xf32>
    %159 = arith.mulf %156, %156 : vector<8x128xf32>
    %160 = vector.broadcast %158 : vector<1x128xf32> to vector<8x128xf32>
    %161 = arith.mulf %160, %159 : vector<8x128xf32>
    %162 = arith.addf %155, %161 : vector<8x128xf32>
    %163 = vector.extract_strided_slice %30 {offsets = [40, 0], sizes = [8, 128], strides = [1, 1]} : vector<48x128xf32> to vector<8x128xf32>
    %c0_64 = arith.constant 0 : index
    %c19 = arith.constant 19 : index
    %c0_65 = arith.constant 0 : index
    %164 = vector.load %arg3[%c0_64, %c19, %c0_65] : memref<1x21x128xf32, #tpu.memory_space<vmem>>, vector<1x1x128xf32>
    %165 = vector.shape_cast %164 : vector<1x1x128xf32> to vector<1x128xf32>
    %166 = arith.mulf %156, %163 : vector<8x128xf32>
    %167 = vector.broadcast %165 : vector<1x128xf32> to vector<8x128xf32>
    %168 = arith.mulf %167, %166 : vector<8x128xf32>
    %169 = arith.addf %162, %168 : vector<8x128xf32>
    %170 = vector.extract_strided_slice %30 {offsets = [40, 0], sizes = [8, 128], strides = [1, 1]} : vector<48x128xf32> to vector<8x128xf32>
    %c0_66 = arith.constant 0 : index
    %c20 = arith.constant 20 : index
    %c0_67 = arith.constant 0 : index
    %171 = vector.load %arg3[%c0_66, %c20, %c0_67] : memref<1x21x128xf32, #tpu.memory_space<vmem>>, vector<1x1x128xf32>
    %172 = vector.shape_cast %171 : vector<1x1x128xf32> to vector<1x128xf32>
    %173 = arith.mulf %170, %170 : vector<8x128xf32>
    %174 = vector.broadcast %172 : vector<1x128xf32> to vector<8x128xf32>
    %175 = arith.mulf %174, %173 : vector<8x128xf32>
    %176 = arith.addf %169, %175 : vector<8x128xf32>
    %c0_68 = arith.constant 0 : index
    %c0_69 = arith.constant 0 : index
    %177 = vector.load %arg14[%c0_68, %c0_69] : memref<8x128xf32, #tpu.memory_space<vmem>>, vector<8x128xf32>
    %c0_70 = arith.constant 0 : index
    %c0_71 = arith.constant 0 : index
    %178 = vector.load %arg4[%c0_70, %c0_71] : memref<1x128xf32, #tpu.memory_space<vmem>>, vector<1x128xf32>
    %179 = vector.broadcast %178 : vector<1x128xf32> to vector<8x128xf32>
    %180 = arith.mulf %176, %179 : vector<8x128xf32>
    %181 = arith.addf %177, %180 : vector<8x128xf32>
    %c0_72 = arith.constant 0 : index
    %c0_73 = arith.constant 0 : index
    %182 = vector.load %arg14[%c0_72, %c0_73] : memref<8x128xf32, #tpu.memory_space<vmem>>, vector<8x128xf32>
    tpu.vector_store %arg14[%c0_72, %c0_73], %181 {strides = array<i32>} : memref<8x128xf32, #tpu.memory_space<vmem>>, vector<8x128xf32>,
    %c0_i32_74 = arith.constant 0 : i32
    %183 = arith.cmpi eq, %arg1, %c0_i32_74 : i32
    %184 = arith.extui %183 : i1 to i32
    %c0_i32_75 = arith.constant 0 : i32
    %185 = arith.cmpi ne, %184, %c0_i32_75 : i32
    scf.if %185 {
      %c0_76 = arith.constant 0 : index
      %c0_77 = arith.constant 0 : index
      %186 = vector.load %arg14[%c0_76, %c0_77] : memref<8x128xf32, #tpu.memory_space<vmem>>, vector<8x128xf32>
      %cst_78 = arith.constant dense<0.000000e+00> : vector<8xf32>
      %187 = vector.multi_reduction <add>, %186, %cst_78 [1] : vector<8x128xf32> to vector<8xf32>
      %188 = vector.shape_cast %187 : vector<8xf32> to vector<8x1xf32>
      %c0_79 = arith.constant 0 : index
      %c0_80 = arith.constant 0 : index
      %c0_81 = arith.constant 0 : index
      %189 = vector.load %arg13[%c0_79, %c0_80, %c0_81] : memref<1x8x1xf32, #tpu.memory_space<vmem>>, vector<1x8x1xf32>
      %190 = vector.shape_cast %189 : vector<1x8x1xf32> to vector<8x1xf32>
      %191 = vector.shape_cast %188 : vector<8x1xf32> to vector<1x8x1xf32>
      tpu.vector_store %arg13[%c0_79, %c0_80, %c0_81], %191 {strides = array<i32>} : memref<1x8x1xf32, #tpu.memory_space<vmem>>, vector<1x8x1xf32>,
    } else {
    }
    return
  }
  func.func @transform_0(%arg0: i32, %arg1: i32) -> (i32, i32, i32) {
    %c0_i32 = arith.constant 0 : i32
    %c0_i32_0 = arith.constant 0 : i32
    return %arg0, %c0_i32, %arg1 : i32, i32, i32
  }
  func.func @transform_1(%arg0: i32, %arg1: i32) -> (i32, i32, i32) {
    %c0_i32 = arith.constant 0 : i32
    %c0_i32_0 = arith.constant 0 : i32
    return %arg0, %c0_i32, %arg1 : i32, i32, i32
  }
  func.func @transform_2(%arg0: i32, %arg1: i32) -> (i32, i32) {
    %c0_i32 = arith.constant 0 : i32
    %c0_i32_0 = arith.constant 0 : i32
    return %c0_i32, %arg1 : i32, i32
  }
  func.func @transform_3(%arg0: i32, %arg1: i32) -> (i32, i32) {
    %c0_i32 = arith.constant 0 : i32
    %c0_i32_0 = arith.constant 0 : i32
    %c0_i32_1 = arith.constant 0 : i32
    return %c0_i32, %c0_i32_0 : i32, i32
  }
  func.func @transform_4(%arg0: i32, %arg1: i32) -> (i32, i32) {
    %c0_i32 = arith.constant 0 : i32
    %c0_i32_0 = arith.constant 0 : i32
    %c0_i32_1 = arith.constant 0 : i32
    return %c0_i32, %c0_i32_0 : i32, i32
  }
  func.func @transform_5(%arg0: i32, %arg1: i32) -> (i32, i32) {
    %c0_i32 = arith.constant 0 : i32
    %c0_i32_0 = arith.constant 0 : i32
    %c0_i32_1 = arith.constant 0 : i32
    return %c0_i32, %c0_i32_0 : i32, i32
  }
  func.func @transform_6(%arg0: i32, %arg1: i32) -> (i32, i32) {
    %c0_i32 = arith.constant 0 : i32
    %c0_i32_0 = arith.constant 0 : i32
    %c0_i32_1 = arith.constant 0 : i32
    return %c0_i32, %c0_i32_0 : i32, i32
  }
  func.func @transform_7(%arg0: i32, %arg1: i32) -> (i32, i32) {
    %c0_i32 = arith.constant 0 : i32
    %c0_i32_0 = arith.constant 0 : i32
    %c0_i32_1 = arith.constant 0 : i32
    return %c0_i32, %c0_i32_0 : i32, i32
  }
  func.func @transform_8(%arg0: i32, %arg1: i32) -> (i32, i32) {
    %c0_i32 = arith.constant 0 : i32
    %c0_i32_0 = arith.constant 0 : i32
    %c0_i32_1 = arith.constant 0 : i32
    return %c0_i32, %c0_i32_0 : i32, i32
  }
  func.func @transform_9(%arg0: i32, %arg1: i32) -> (i32, i32) {
    %c0_i32 = arith.constant 0 : i32
    %c0_i32_0 = arith.constant 0 : i32
    %c0_i32_1 = arith.constant 0 : i32
    return %c0_i32, %c0_i32_0 : i32, i32
  }
  func.func @transform_10(%arg0: i32, %arg1: i32) -> (i32, i32) {
    %c0_i32 = arith.constant 0 : i32
    %c0_i32_0 = arith.constant 0 : i32
    %c0_i32_1 = arith.constant 0 : i32
    return %c0_i32, %c0_i32_0 : i32, i32
  }
  func.func @transform_11(%arg0: i32, %arg1: i32) -> (i32, i32, i32) {
    %c0_i32 = arith.constant 0 : i32
    %c0_i32_0 = arith.constant 0 : i32
    %c0_i32_1 = arith.constant 0 : i32
    return %arg0, %c0_i32, %c0_i32_0 : i32, i32, i32
  }
}

</mosaic_0001>

<bundles_post_ra>
// kernel: _kgram_forward.1
= control target key start
LH: loop header
LB: loop body
LE: loop exit
PB: predicated region body
PF: predicated region fallthrough
CT: control target
= control target key end

     0   :  { %s4088_s17 = smov 0   ;;  %s4090_s18 = smov 0   ;;  %s4680_s0 = inlined_call_operand.vmem [shape: f32[2,4,128], index: 0, kind: input, shape index: {}]   ;;  %s4681_s1 = inlined_call_operand.vmem [shape: f32[2,21,128], index: 1, kind: input, shape index: {}]   ;;  %s4682_s2 = inlined_call_operand.vmem [shape: f32[1,128], index: 2, kind: input, shape index: {}]   ;;  %s4683_s3 = inlined_call_operand.vmem [shape: f32[32,4], index: 3, kind: input, shape index: {}]   ;;  %s4684_s4 = inlined_call_operand.vmem [shape: f32[32,1], index: 4, kind: input, shape index: {}]   ;;  %s4685_s5 = inlined_call_operand.vmem [shape: f32[32,32], index: 5, kind: input, shape index: {}]   ;;  %s4686_s6 = inlined_call_operand.vmem [shape: f32[32,1], index: 6, kind: input, shape index: {}]   ;;  %s4687_s7 = inlined_call_operand.vmem [shape: f32[32,32], index: 7, kind: input, shape index: {}]   ;;  %s4688_s8 = inlined_call_operand.vmem [shape: f32[32,1], index: 8, kind: input, shape index: {}]   ;;  %s4689_s9 = inlined_call_operand.vmem [shape: f32[48,32], index: 9, kind: input, shape index: {}]   ;;  %s4690_s10 = inlined_call_operand.vmem [shape: f32[48,1], index: 10, kind: input, shape index: {}]   ;;  %s4691_s11 = inlined_call_operand.vmem [shape: f32[2,8,1], index: 11, kind: output, shape index: {}]  }
   0x1   :  { %s4092_s19 = smov 0  }
   0x2 LB: > { %s33_s20 = sadd.s32 1, %s4021_s18  ;;  %p3443_p0 = scmp.ge.s32.totalorder %s4025_s19, 1  ;;  %s4025_s19 = sphi %s4092_s19, %s21_s19   ;;  %s4021_s18 = sphi %s4090_s18, %s4693_s18   ;;  %s4017_s17 = sphi %s4088_s17, %s4692_s17  }
   0x3   : > { %p35_p1 = scmp.ge.s32.totalorder %s33_s20, 2  ;;  %p376_p2 = scmp.lt.s32.totalorder %s4025_s19, 3 }
   0x5   : > { %s4695_s20 = smov (%p35_p1, %s33_s20), 0  ;;  %p377_p3 = pnand %p3443_p0, %p376_p2 }
   0x6   : > { %p428_p4 = scmp.lt.s32.totalorder (!%p377_p3), %s4017_s17, 1 }
   0x7   : > { %380 = sbr.rel (%p377_p3) target bundleno = 1160 (0x488), region = 64 }
   0xc   : > { %v456_v0 = vld [vmem:[%s4683_s3] sm:$0xff]  ;;  %vm484_vm0 = vcmask 31744   ;;  %v457_v1 = vld [vmem:[%s4683_s3 + $0x8] sm:$0xff]  ;;  %v458_v2 = vld [vmem:[%s4683_s3 + $0x10] sm:$0xff]  ;;  %s4697_s17 = smov (!%p428_p4, %s4017_s17), 1  ;;  %v4027_v12 = vmov 0  }
   0xd   : > { %v486_v3 = vsel %vm484_vm0, %v456_v0, 0  ;;  %v489_v4 = vsel %vm484_vm0, %v457_v1, 0  ;;  %v492_v5 = vsel %vm484_vm0, %v458_v2, 0  ;;  %v459_v6 = vld [vmem:[%s4683_s3 + $0x18] sm:$0xff]  ;;  %4001 = vset.pattern.permute.xlu0 %v4027_v12  ;;  %4002 = vset.pattern.permute.xlu1 %v4027_v12  ;;  %v461_v14 = vld [vmem:[%s4684_s4 + $0x8] sm:$0xff]  ;;  %s3444_s14 = sshll.u32 %s4697_s17, 2 }
   0xe   : > { %v463_v7 = vld [vmem:[%s4684_s4 + $0x18] sm:$0xff]  ;;  %v4123_v8 = vand.u32 4294901760, %v486_v3  ;;  %v4125_v9 = vand.u32 4294901760, %v489_v4  ;;  %v4127_v10 = vand.u32 4294901760, %v492_v5  ;;  %v495_v11 = vsel %vm484_vm0, %v459_v6, 0  ;;  %v462_v18 = vld [vmem:[%s4684_s4 + $0x10] sm:$0xff]  ;;  %471 = vperm.xlu1 %4002, %v461_v14   ;;  %s434_s23 = scalar_lea.vmem %s4680_s0, %s3444_s14 }
   0xf   : > { %v4129_v13 = vand.u32 4294901760, %v495_v11  ;;  %481 = vperm.xlu0 %4001, %v463_v7   ;;  %vm497_vm1 = vcmask 1043456   ;;  %v460_v20 = vld [vmem:[%s4684_s4] sm:$0xff]  ;;  %v1087_v31 = vld [vmem:[%s4686_s6 + $0x18] sm:$0xff]  ;;  %v1086_v37 = vld [vmem:[%s4686_s6 + $0x10] sm:$0xff]  ;;  %vm1108_vm2 = vcmask 261120  }
  0x10   : > { %v4136_v15 = vsub.f32 %v486_v3, %v4123_v8  ;;  %v4139_v16 = vsub.f32 %v489_v4, %v4125_v9  ;;  %v4142_v17 = vsub.f32 %v492_v5, %v4127_v10  ;;  %3667 = vmatprep.mubr.f32.mxu1 %v4123_v8  ;;  %v455_v21 = vld [vmem:[%s434_s23] sm:$0xf]  ;;  %v1085_v39 = vld [vmem:[%s4686_s6 + $0x8] sm:$0xff]  ;;  %v1746_v44 = vld [vmem:[%s4688_s8 + $0x18] sm:$0xff]  ;;  %s3975_s22 = smul.u32 24, %s4697_s17  ;;  %s3446_s28 = sshll.u32 %s4697_s17, 3 }
  0x11   : > { %v4152_v19 = vsub.f32 %v495_v11, %v4129_v13  ;;  %v499_v25 = vsel %vm497_vm1, %v455_v21, 0  ;;  %v1084_v42 = vld [vmem:[%s4686_s6] sm:$0xff]  ;;  %v1744_v45 = vld [vmem:[%s4688_s8 + $0x8] sm:$0xff]  ;;  %v1745_v46 = vld [vmem:[%s4688_s8 + $0x10] sm:$0xff]  ;;  %s449_s12 = scalar_lea.vmem %s4691_s11, %s3446_s28  ;;  %vm3341_vm3 = vcmask 7168  }
  0x12   : > { %v569_v22 = vand.u32 4294901760, %v4136_v15  ;;  %v579_v23 = vand.u32 4294901760, %v4139_v16  ;;  %v589_v24 = vand.u32 4294901760, %v4142_v17  ;;  %v532_v27 = vand.u32 4294901760, %v499_v25  ;;  %466 = vperm.xlu1 %4002, %v460_v20   ;;  %v2403_v47 = vld [vmem:[%s4690_s10] sm:$0xff]  ;;  %v2405_v49 = vld [vmem:[%s4690_s10 + $0x10] sm:$0xff]  ;;  %s4614_s25 = scalar_lea.vmem %s4681_s1, %s3975_s22 }
  0x13   : > { %v599_v26 = vand.u32 4294901760, %v4152_v19  ;;  %476 = vperm.xlu0 %4001, %v462_v18   ;;  %v1743_v48 = vld [vmem:[%s4688_s8] sm:$0xff]  ;;  %v2404_v50 = vld [vmem:[%s4690_s10 + $0x8] sm:$0xff]  ;;  %v2406_v52 = vld [vmem:[%s4690_s10 + $0x18] sm:$0xff] }
  0x14   : > { %v570_v28 = vsub.f32 %v4136_v15, %v569_v22  ;;  %v580_v29 = vsub.f32 %v4139_v16, %v579_v23  ;;  %v590_v30 = vsub.f32 %v4142_v17, %v589_v24  ;;  %3657 = vmatprep.subr.mxu0 %v532_v27  ;;  %v639_v36 = vsub.f32 %v499_v25, %v532_v27  ;;  %v2407_v51 = vld [vmem:[%s4690_s10 + $0x20] sm:$0xff]  ;;  %v2408_v53 = vld [vmem:[%s4690_s10 + $0x28] sm:$0xff] }
  0x15   : > { %v600_v32 = vsub.f32 %v4152_v19, %v599_v26  ;;  %3658 = vmatpush3.msra.mxu0 %v532_v27  ;;  %v1080_v54 = vld [vmem:[%s4685_s5] sm:$0xff] }
  0x16   : > { %v571_v33 = vand.u32 4294901760, %v570_v28  ;;  %v581_v34 = vand.u32 4294901760, %v580_v29  ;;  %v591_v35 = vand.u32 4294901760, %v590_v30  ;;  %v640_v38 = vand.u32 4294901760, %v639_v36  ;;  %3673 = vmatprep.subr.mxu0 %v639_v36  ;;  %1100 = vperm.xlu1 %4002, %v1086_v37   ;;  %v1083_v37 = vld [vmem:[%s4685_s5 + $0x18] sm:$0xff] }
  0x17   : > { %1105 = vperm.xlu0 %4001, %v1087_v31   ;;  %v601_v40 = vand.u32 4294901760, %v600_v32  ;;  %v1110_v55 = vsel %vm1108_vm2, %v1080_v54, 0  ;;  %v1082_v31 = vld [vmem:[%s4685_s5 + $0x10] sm:$0xff] }
  0x18   : > { %3659 = vmatprep.mubr.f32.mxu0 %v571_v33  ;;  %v641_v41 = vsub.f32 %v639_v36, %v640_v38  ;;  %v4230_v56 = vand.u32 4294901760, %v1110_v55 }
  0x19   : > { %3660 = vmatmul.mubr.f32.vlgmr.msra.gmra.mxu0 %v581_v34 }
  0x1a   : > { %3662 = vmatprep.mubr.f32.mxu0 %v591_v35  ;;  %3674 = vmatpush3.msra.mxu0 %v639_v36  ;;  %v642_v43 = vand.u32 4294901760, %v641_v41  ;;  %v4233_v57 = vsub.f32 %v1110_v55, %v4230_v56  ;;  %v1116_v41 = vsel %vm1108_vm2, %v1082_v31, 0 }
  0x1b   : > { %3689 = vmatprep.subr.mxu0 %v640_v38  ;;  %1095 = vperm.xlu0 %4001, %v1085_v39  }
  0x1c   : > { %1090 = vperm.xlu1 %4002, %v1084_v42   ;;  %3665 = vmatprep.subr.mxu1 %v642_v43  ;;  %v1192_v58 = vand.u32 4294901760, %v4233_v57 }
  0x1d   : > { %3663 = vmatmul.mubr.f32.gmra.mxu0 %v601_v40  ;;  %3666 = vmatpush3.msra.mxu1 %v642_v43 }
  0x1e   : > { %3675 = vmatprep.mubr.f32.mxu0 %v4136_v15  ;;  %3668 = vmatmul.mubr.f32.vlgmr.msra.gmra.mxu1 %v4125_v9  ;;  %v1193_v59 = vsub.f32 %v4233_v57, %v1192_v58 }
  0x1f   : > { %1764 = vperm.xlu0 %4001, %v1746_v44   ;;  %3681 = vmatprep.subr.mxu1 %v532_v27 }
  0x20   : > { %3682 = vmatpush3.msra.mxu1 %v532_v27  ;;  %3670 = vmatprep.mubr.f32.mxu1 %v4127_v10  ;;  %v1194_v60 = vand.u32 4294901760, %v1193_v59 }
  0x21   : > { %3676 = vmatmul.mubr.f32.vlgmr.msra.gmra.mxu0 %v4139_v16  ;;  %3697 = vmatprep.subr.mxu1 %v532_v27 }
  0x22   : > { %3678 = vmatprep.mubr.f32.mxu0 %v4142_v17  ;;  %3690 = vmatpush3.msra.mxu0 %v640_v38 }
  0x23   : > { %3671 = vmatmul.mubr.f32.gmra.mxu1 %v4129_v13  ;;  %1754 = vperm.xlu0 %4001, %v1744_v45  }
  0x24   : > { %3683 = vmatprep.mubr.f32.mxu1 %v569_v22  ;;  %1759 = vperm.xlu1 %4002, %v1745_v46   ;;  %v1119_v46 = vsel %vm1108_vm2, %v1083_v37, 0 }
  0x25   : > { %3679 = vmatmul.mubr.f32.gmra.mxu0 %v4152_v19  ;;  %v1081_v19 = vld [vmem:[%s4685_s5 + $0x8] sm:$0xff]  ;;  %v4259_v55 = vand.u32 4294901760, %v1119_v46 }
  0x26   : > { %3691 = vmatprep.mubr.f32.mxu0 %v4123_v8  ;;  %v1113_v29 = vsel %vm1108_vm2, %v1081_v19, 0 }
  0x27   : > { %3684 = vmatmul.mubr.f32.vlgmr.msra.gmra.mxu1 %v579_v23  ;;  %2411 = vperm.xlu0 %4001, %v2403_v47   ;;  %v4247_v36 = vand.u32 4294901760, %v1113_v29 }
  0x28   : > { %3698 = vmatpush3.msra.mxu1 %v532_v27  ;;  %3686 = vmatprep.mubr.f32.mxu1 %v589_v24 }
  0x29   : > { %3692 = vmatmul.mubr.f32.vlgmr.msra.gmra.mxu0 %v4125_v9  ;;  %1749 = vperm.xlu1 %4002, %v1743_v48  }
  0x2a   : > { %3694 = vmatprep.mubr.f32.mxu0 %v4127_v10 }
  0x2b   : > { %3687 = vmatmul.mubr.f32.gmra.mxu1 %v599_v26  ;;  %2421 = vperm.xlu0 %4001, %v2405_v49   ;;  %v4254_v49 = vand.u32 4294901760, %v1116_v41 }
  0x2c   : > { %3699 = vmatprep.mubr.f32.mxu1 %v4123_v8 }
  0x2d   : > { %3695 = vmatmul.mubr.f32.gmra.mxu0 %v4129_v13  ;;  %2416 = vperm.xlu1 %4002, %v2404_v50  }
  0x2e   : > { %3713 = vmatprep.mubr.f32.mxu0 %v1194_v60 }
  0x2f   : > { %3700 = vmatmul.mubr.f32.vlgmr.msra.gmra.mxu1 %v4125_v9  ;;  %2431 = vperm.xlu0 %4001, %v2407_v51  }
  0x30   : > { %3702 = vmatprep.mubr.f32.mxu1 %v4127_v10 }
  0x31   : > { %2426 = vperm.xlu1 %4002, %v2406_v52  }
  0x33   : > { %3703 = vmatmul.mubr.f32.gmra.mxu1 %v4129_v13 }
  0x34   : > { %3727 = vmatprep.mubr.f32.mxu1 %v4230_v56 }
  0x35   : > { %2436 = vperm.xlu1 %4002, %v2408_v53   ;;  %v4257_v53 = vsub.f32 %v1113_v29, %v4247_v36 }
  0x89   : > { %v472_v0 = vpop.permute.xlu1 %471 }
  0x8a   : > { %v482_v5 = vpop.permute.xlu0 %481 }
  0x8d   : > { %v467_v8 = vpop.permute.xlu1 %466 }
  0x8e   : > { %v477_v17 = vpop.permute.xlu0 %476 }
  0xd9   : > { %v3661_v61 = vpop.f32.mrf.mxu0 }
  0xda   : > { %v584_v3 = vadd.f32 %v3661_v61, %v472_v0  ;;  %v4264_v0 = vsub.f32 %v1116_v41, %v4254_v49 }
  0xdb   : > { %v573_v62 = vpop.f32.mrf.mxu0 }
  0xdc   : > { %v574_v10 = vadd.f32 %v573_v62, %v467_v8 }
  0xdd   : > { %v3664_v63 = vpop.f32.mrf.mxu0 }
  0xde   : > { %v3669_v2 = vpop.f32.mrf.mxu1  ;;  %v604_v11 = vadd.f32 %v3664_v63, %v482_v5  ;;  %v4270_v5 = vsub.f32 %v1119_v46, %v4259_v55 }
  0xdf   : > { %v593_v1 = vpop.f32.mrf.mxu0  ;;  %v686_v12 = vadd.f32 %v3669_v2, %v584_v3  ;;  %v1202_v3 = vand.u32 4294901760, %v4257_v53 }
  0xe0   : > { %v679_v6 = vpop.f32.mrf.mxu1  ;;  %v594_v20 = vadd.f32 %v593_v1, %v477_v17 }
  0xe1   : > { %v3677_v4 = vpop.f32.mrf.mxu0  ;;  %v680_v15 = vadd.f32 %v679_v6, %v574_v10 }
  0xe2   : > { %v779_v21 = vadd.f32 %v3677_v4, %v686_v12  ;;  %v1203_v12 = vsub.f32 %v4257_v53, %v1202_v3 }
  0xe3   : > { %v771_v7 = vpop.f32.mrf.mxu0  ;;  %v3672_v9 = vpop.f32.mrf.mxu1 }
  0xe4   : > { %v698_v22 = vadd.f32 %v3672_v9, %v604_v11  ;;  %v772_v25 = vadd.f32 %v771_v7, %v680_v15  ;;  %v1212_v9 = vand.u32 4294901760, %v4264_v0  ;;  %v1204_v19 = vand.u32 4294901760, %v1203_v12 }
  0xe5   : > { %v3680_v13 = vpop.f32.mrf.mxu0  ;;  %v691_v14 = vpop.f32.mrf.mxu1 }
  0xe6   : > { %v692_v26 = vadd.f32 %v691_v14, %v594_v20  ;;  %v793_v32 = vadd.f32 %v3680_v13, %v698_v22  ;;  %v1222_v14 = vand.u32 4294901760, %v4270_v5  ;;  %v1213_v17 = vsub.f32 %v4264_v0, %v1212_v9 }
  0xe7   : > { %v785_v16 = vpop.f32.mrf.mxu0  ;;  %v3685_v18 = vpop.f32.mrf.mxu1 }
  0xe8   : > { %v875_v27 = vadd.f32 %v3685_v18, %v779_v21  ;;  %v786_v38 = vadd.f32 %v785_v16, %v692_v26  ;;  %v1223_v22 = vsub.f32 %v4270_v5, %v1222_v14  ;;  %v1214_v26 = vand.u32 4294901760, %v1213_v17 }
  0xe9   : > { %v3693_v23 = vpop.f32.mrf.mxu0  ;;  %v866_v24 = vpop.f32.mrf.mxu1 }
  0xea   : > { %v867_v33 = vadd.f32 %v866_v24, %v772_v25  ;;  %v971_v39 = vadd.f32 %v3693_v23, %v875_v27  ;;  %v1224_v29 = vand.u32 4294901760, %v1223_v22 }
  0xeb   : > { %v964_v28 = vpop.f32.mrf.mxu0  ;;  %v3688_v30 = vpop.f32.mrf.mxu1 }
  0xec   : > { %v891_v40 = vadd.f32 %v3688_v30, %v793_v32  ;;  %v965_v43 = vadd.f32 %v964_v28, %v867_v33 }
  0xed   : > { %v882_v34 = vpop.f32.mrf.mxu1  ;;  %v3696_v35 = vpop.f32.mrf.mxu0 }
  0xee   : > { %v883_v44 = vadd.f32 %v882_v34, %v786_v38  ;;  %v983_v50 = vadd.f32 %v3696_v35, %v891_v40 }
  0xef   : > { %v3701_v42 = vpop.f32.mrf.mxu1  ;;  %v976_v47 = vpop.f32.mrf.mxu0 }
  0xf0   : > { %v1061_v45 = vadd.f32 %v3701_v42, %v971_v39  ;;  %v977_v59 = vadd.f32 %v976_v47, %v883_v44  ;;  %v1106_v42 = vpop.permute.xlu0 %1105 }
  0xf1   : > { %v1054_v48 = vpop.f32.mrf.mxu1 }
  0xf2   : > { %v1077_v51 = vmax.f32 %v1061_v45, 0.0  ;;  %v1055_v52 = vadd.f32 %v1054_v48, %v965_v43  ;;  %v1101_v45 = vpop.permute.xlu1 %1100 }
  0xf3   : > { %v3704_v54 = vpop.f32.mrf.mxu1 }
  0xf4   : > { %v1076_v60 = vmax.f32 %v1055_v52, 0.0  ;;  %v1073_v61 = vadd.f32 %v3704_v54, %v983_v50  ;;  %v4261_v62 = vand.u32 4294901760, %v1077_v51  ;;  %v1096_v48 = vpop.permute.xlu0 %1095 }
  0xf5   : > { %v1066_v63 = vpop.f32.mrf.mxu1 }
  0xf6   : > { %v1079_v1 = vmax.f32 %v1073_v61, 0.0  ;;  %v1067_v2 = vadd.f32 %v1066_v63, %v977_v59  ;;  %v4267_v4 = vand.u32 4294901760, %v1076_v60  ;;  %v1270_v8 = vsub.f32 %v1077_v51, %v4261_v62  ;;  %v1091_v51 = vpop.permute.xlu1 %1090 }
  0xf8   : > { %v4272_v6 = vand.u32 4294901760, %v1079_v1  ;;  %v1078_v7 = vmax.f32 %v1067_v2, 0.0  ;;  %v1277_v13 = vsub.f32 %v1076_v60, %v4267_v4  ;;  %v1271_v18 = vand.u32 4294901760, %v1270_v8 }
  0xfa   : > { %v1256_v10 = vsub.f32 %v1079_v1, %v4272_v6  ;;  %v4277_v11 = vand.u32 4294901760, %v1078_v7  ;;  %3705 = vmatprep.subr.mxu0 %v4272_v6  ;;  %v1278_v23 = vand.u32 4294901760, %v1277_v13  ;;  %v1272_v27 = vsub.f32 %v1270_v8, %v1271_v18 }
  0xfb   : > { %3706 = vmatpush3.msra.mxu0 %v4272_v6 }
  0xfc   : > { %v1263_v15 = vsub.f32 %v1078_v7, %v4277_v11  ;;  %3707 = vmatprep.subr.mxu0 %v4277_v11  ;;  %v1257_v16 = vand.u32 4294901760, %v1256_v10  ;;  %v1279_v30 = vsub.f32 %v1277_v13, %v1278_v23  ;;  %v1273_v31 = vand.u32 4294901760, %v1272_v27 }
  0xfd   : > { %3708 = vmatpush3.msra.mxu0 %v4277_v11 }
  0xfe   : > { %3709 = vmatprep.subr.mxu0 %v4261_v62  ;;  %v1258_v20 = vsub.f32 %v1256_v10, %v1257_v16  ;;  %v1264_v21 = vand.u32 4294901760, %v1263_v15  ;;  %v1280_v32 = vand.u32 4294901760, %v1279_v30 }
  0xff   : > { %3710 = vmatpush3.msra.mxu0 %v4261_v62 }
 0x100   : > { %3711 = vmatprep.subr.mxu0 %v4267_v4  ;;  %v1259_v24 = vand.u32 4294901760, %v1258_v20  ;;  %v1265_v25 = vsub.f32 %v1263_v15, %v1264_v21 }
 0x101   : > { %3712 = vmatpush3.msra.mxu0 %v4267_v4 }
 0x102   : > { %3714 = vmatmul.mubr.f32.vlgmr.msra.gmra.mxu0 %v1204_v19  ;;  %3719 = vmatprep.subr.mxu1 %v1259_v24  ;;  %v1266_v28 = vand.u32 4294901760, %v1265_v25 }
 0x103   : > { %3733 = vmatprep.subr.mxu0 %v1256_v10  ;;  %3720 = vmatpush3.msra.mxu1 %v1259_v24 }
 0x104   : > { %3734 = vmatpush3.msra.mxu0 %v1256_v10  ;;  %3721 = vmatprep.subr.mxu1 %v1266_v28  ;;  %v1741_v10 = vld [vmem:[%s4687_s7 + $0x10] sm:$0xff] }
 0x105   : > { %3735 = vmatprep.subr.mxu0 %v1263_v15  ;;  %3716 = vmatprep.mubr.f32.mxu0 %v1214_v26  ;;  %v1774_v20 = vsel %vm1108_vm2, %v1741_v10, 0 }
 0x106   : > { %3722 = vmatpush3.msra.mxu1 %v1266_v28  ;;  %3736 = vmatpush3.msra.mxu0 %v1263_v15  ;;  %v4366_v28 = vand.u32 4294901760, %v1774_v20 }
 0x107   : > { %3717 = vmatmul.mubr.f32.gmra.mxu0 %v1224_v29  ;;  %3723 = vmatprep.subr.mxu1 %v1273_v31 }
 0x108   : > { %3737 = vmatprep.subr.mxu0 %v1270_v8  ;;  %3724 = vmatpush3.msra.mxu1 %v1273_v31 }
 0x109   : > { %3738 = vmatpush3.msra.mxu0 %v1270_v8  ;;  %3725 = vmatprep.subr.mxu1 %v1280_v32 }
 0x10a   : > { %3739 = vmatprep.subr.mxu0 %v1277_v13  ;;  %3726 = vmatpush3.msra.mxu1 %v1280_v32 }
 0x10b   : > { %3740 = vmatpush3.msra.mxu0 %v1277_v13  ;;  %3728 = vmatmul.mubr.f32.vlgmr.msra.gmra.mxu1 %v4247_v36 }
 0x10c   : > { %3741 = vmatprep.mubr.f32.mxu0 %v4233_v57  ;;  %3747 = vmatprep.subr.mxu1 %v4272_v6  ;;  %v1739_v57 = vld [vmem:[%s4687_s7] sm:$0xff] }
 0x10d   : > { %3761 = vmatprep.subr.mxu0 %v1257_v16  ;;  %3742 = vmatmul.mubr.f32.vlgmr.msra.gmra.mxu0 %v4257_v53 }
 0x10e   : > { %3748 = vmatpush3.msra.mxu1 %v4272_v6  ;;  %3762 = vmatpush3.msra.mxu0 %v1257_v16  ;;  %v1742_v16 = vld [vmem:[%s4687_s7 + $0x18] sm:$0xff] }
 0x10f   : > { %3749 = vmatprep.subr.mxu1 %v4277_v11  ;;  %3763 = vmatprep.subr.mxu0 %v1264_v21  ;;  %v1777_v25 = vsel %vm1108_vm2, %v1742_v16, 0 }
 0x110   : > { %3730 = vmatprep.mubr.f32.mxu1 %v4254_v49  ;;  %3750 = vmatpush3.msra.mxu1 %v4277_v11 }
 0x111   : > { %3764 = vmatpush3.msra.mxu0 %v1264_v21  ;;  %3731 = vmatmul.mubr.f32.gmra.mxu1 %v4259_v55 }
 0x112   : > { %3751 = vmatprep.subr.mxu1 %v4261_v62  ;;  %3765 = vmatprep.subr.mxu0 %v1271_v18 }
 0x113   : > { %3744 = vmatprep.mubr.f32.mxu0 %v4264_v0  ;;  %3752 = vmatpush3.msra.mxu1 %v4261_v62 }
 0x114   : > { %3766 = vmatpush3.msra.mxu0 %v1271_v18  ;;  %3753 = vmatprep.subr.mxu1 %v4267_v4 }
 0x115   : > { %3745 = vmatmul.mubr.f32.gmra.mxu0 %v4270_v5  ;;  %3767 = vmatprep.subr.mxu0 %v1278_v23 }
 0x116   : > { %3754 = vmatpush3.msra.mxu1 %v4267_v4  ;;  %3755 = vmatprep.mubr.f32.mxu1 %v1192_v58  ;;  %v1768_v58 = vsel %vm1108_vm2, %v1739_v57, 0 }
 0x117   : > { %3768 = vmatpush3.msra.mxu0 %v1278_v23  ;;  %3756 = vmatmul.mubr.f32.vlgmr.msra.gmra.mxu1 %v1202_v3  ;;  %v4342_v33 = vand.u32 4294901760, %v1768_v58 }
 0x118   : > { %3775 = vmatprep.subr.mxu1 %v4272_v6  ;;  %3769 = vmatprep.mubr.f32.mxu0 %v4230_v56 }
 0x119   : > { %3776 = vmatpush3.msra.mxu1 %v4272_v6  ;;  %3770 = vmatmul.mubr.f32.vlgmr.msra.gmra.mxu0 %v4247_v36  ;;  %v4345_v34 = vsub.f32 %v1768_v58, %v4342_v33  ;;  %v4371_v58 = vand.u32 4294901760, %v1777_v25 }
 0x11a   : > { %3777 = vmatprep.subr.mxu1 %v4277_v11  ;;  %3758 = vmatprep.mubr.f32.mxu1 %v1212_v9 }
 0x11b   : > { %3778 = vmatpush3.msra.mxu1 %v4277_v11  ;;  %3772 = vmatprep.mubr.f32.mxu0 %v4254_v49 }
 0x11c   : > { %3759 = vmatmul.mubr.f32.gmra.mxu1 %v1222_v14  ;;  %3779 = vmatprep.subr.mxu1 %v4261_v62 }
 0x11d   : > { %3780 = vmatpush3.msra.mxu1 %v4261_v62  ;;  %3773 = vmatmul.mubr.f32.gmra.mxu0 %v4259_v55  ;;  %v1740_v62 = vld [vmem:[%s4687_s7 + $0x8] sm:$0xff] }
 0x11e   : > { %3781 = vmatprep.subr.mxu1 %v4267_v4  ;;  %3783 = vmatprep.mubr.f32.mxu1 %v4230_v56  ;;  %v1850_v56 = vand.u32 4294901760, %v4345_v34  ;;  %v1771_v8 = vsel %vm1108_vm2, %v1740_v62, 0 }
 0x11f   : > { %3782 = vmatpush3.msra.mxu1 %v4267_v4  ;;  %v4359_v15 = vand.u32 4294901760, %v1771_v8 }
 0x120   : > { %3784 = vmatmul.mubr.f32.vlgmr.msra.gmra.mxu1 %v4247_v36  ;;  %v1851_v35 = vsub.f32 %v4345_v34, %v1850_v56 }
 0x121   : > { %3786 = vmatprep.mubr.f32.mxu1 %v4254_v49  ;;  %v4369_v32 = vsub.f32 %v1771_v8, %v4359_v15 }
 0x122   : > { %v1852_v36 = vand.u32 4294901760, %v1851_v35 }
 0x124   : > { %3787 = vmatmul.mubr.f32.gmra.mxu1 %v4259_v55  ;;  %3797 = vmatprep.mubr.f32.mxu0 %v1852_v36 }
 0x125   : > { %3811 = vmatprep.mubr.f32.mxu1 %v4342_v33 }
 0x1c2   : > { %v3715_v37 = vpop.f32.mrf.mxu0 }
 0x1c3   : > { %v1207_v49 = vadd.f32 %v3715_v37, %v1096_v48 }
 0x1c4   : > { %v1196_v38 = vpop.f32.mrf.mxu0 }
 0x1c5   : > { %v1197_v52 = vadd.f32 %v1196_v38, %v1091_v51 }
 0x1c7   : > { %v3718_v39 = vpop.f32.mrf.mxu0 }
 0x1c8   : > { %v1227_v55 = vadd.f32 %v3718_v39, %v1106_v42 }
 0x1c9   : > { %v1216_v40 = vpop.f32.mrf.mxu0 }
 0x1ca   : > { %v1217_v63 = vadd.f32 %v1216_v40, %v1101_v45  ;;  %v4376_v40 = vsub.f32 %v1774_v20, %v4366_v28  ;;  %v4382_v45 = vsub.f32 %v1777_v25, %v4371_v58 }
 0x1cb   : > { %v3729_v41 = vpop.f32.mrf.mxu1 }
 0x1cc   : > { %v1324_v53 = vadd.f32 %v3729_v41, %v1207_v49  ;;  %v1870_v49 = vand.u32 4294901760, %v4376_v40 }
 0x1cd   : > { %v1317_v43 = vpop.f32.mrf.mxu1  ;;  %v3743_v44 = vpop.f32.mrf.mxu0 }
 0x1ce   : > { %v1318_v59 = vadd.f32 %v1317_v43, %v1197_v52  ;;  %v1423_v0 = vadd.f32 %v3743_v44, %v1324_v53  ;;  %v1860_v43 = vand.u32 4294901760, %v4369_v32 }
 0x1cf   : > { %v1415_v47 = vpop.f32.mrf.mxu0 }
 0x1d0   : > { %v1416_v4 = vadd.f32 %v1415_v47, %v1318_v59  ;;  %v1861_v52 = vsub.f32 %v4369_v32, %v1860_v43 }
 0x1d1   : > { %v3732_v46 = vpop.f32.mrf.mxu1 }
 0x1d2   : > { %v1336_v1 = vadd.f32 %v3732_v46, %v1227_v55  ;;  %v1862_v62 = vand.u32 4294901760, %v1861_v52 }
 0x1d3   : > { %v1329_v50 = vpop.f32.mrf.mxu1 }
 0x1d4   : > { %v1330_v5 = vadd.f32 %v1329_v50, %v1217_v63 }
 0x1d5   : > { %v3746_v54 = vpop.f32.mrf.mxu0 }
 0x1d6   : > { %v1437_v11 = vadd.f32 %v3746_v54, %v1336_v1  ;;  %v1880_v54 = vand.u32 4294901760, %v4382_v45 }
 0x1d7   : > { %v1429_v60 = vpop.f32.mrf.mxu0  ;;  %v3757_v61 = vpop.f32.mrf.mxu1 }
 0x1d8   : > { %v1522_v6 = vadd.f32 %v3757_v61, %v1423_v0  ;;  %v1430_v17 = vadd.f32 %v1429_v60, %v1330_v5  ;;  %v1871_v60 = vsub.f32 %v4376_v40, %v1870_v49  ;;  %v1881_v1 = vsub.f32 %v4382_v45, %v1880_v54 }
 0x1d9   : > { %v1513_v2 = vpop.f32.mrf.mxu1  ;;  %v3771_v3 = vpop.f32.mrf.mxu0 }
 0x1da   : > { %v1514_v12 = vadd.f32 %v1513_v2, %v1416_v4  ;;  %v1627_v18 = vadd.f32 %v3771_v3, %v1522_v6  ;;  %v1872_v5 = vand.u32 4294901760, %v1871_v60  ;;  %v1882_v8 = vand.u32 4294901760, %v1881_v1 }
 0x1db   : > { %v1620_v7 = vpop.f32.mrf.mxu0 }
 0x1dc   : > { %v3760_v9 = vpop.f32.mrf.mxu1  ;;  %v1621_v22 = vadd.f32 %v1620_v7, %v1514_v12 }
 0x1dd   : > { %v3774_v14 = vpop.f32.mrf.mxu0  ;;  %v1538_v19 = vadd.f32 %v3760_v9, %v1437_v11 }
 0x1de   : > { %v1529_v13 = vpop.f32.mrf.mxu1 }
 0x1df   : > { %v1530_v23 = vadd.f32 %v1529_v13, %v1430_v17  ;;  %v1632_v26 = vpop.f32.mrf.mxu0  ;;  %v1639_v29 = vadd.f32 %v3774_v14, %v1538_v19 }
 0x1e0   : > { %v3785_v21 = vpop.f32.mrf.mxu1 }
 0x1e1   : > { %v1720_v24 = vadd.f32 %v3785_v21, %v1627_v18  ;;  %v1633_v35 = vadd.f32 %v1632_v26, %v1530_v23  ;;  %v1765_v21 = vpop.permute.xlu0 %1764 }
 0x1e2   : > { %v1713_v27 = vpop.f32.mrf.mxu1 }
 0x1e3   : > { %v1736_v30 = vmax.f32 %v1720_v24, 0.0  ;;  %v1714_v31 = vadd.f32 %v1713_v27, %v1621_v22  ;;  %v1760_v24 = vpop.permute.xlu1 %1759 }
 0x1e4   : > { %v3788_v57 = vpop.f32.mrf.mxu1 }
 0x1e5   : > { %v1735_v36 = vmax.f32 %v1714_v31, 0.0  ;;  %v1732_v37 = vadd.f32 %v3788_v57, %v1639_v29  ;;  %v4373_v38 = vand.u32 4294901760, %v1736_v30  ;;  %v1755_v27 = vpop.permute.xlu0 %1754 }
 0x1e6   : > { %v1725_v39 = vpop.f32.mrf.mxu1 }
 0x1e7   : > { %v1738_v41 = vmax.f32 %v1732_v37, 0.0  ;;  %v1726_v42 = vadd.f32 %v1725_v39, %v1633_v35  ;;  %v4379_v44 = vand.u32 4294901760, %v1735_v36  ;;  %v1928_v48 = vsub.f32 %v1736_v30, %v4373_v38  ;;  %v1750_v30 = vpop.permute.xlu1 %1749 }
 0x1e9   : > { %v4384_v46 = vand.u32 4294901760, %v1738_v41  ;;  %v1737_v47 = vmax.f32 %v1726_v42, 0.0  ;;  %v1935_v53 = vsub.f32 %v1735_v36, %v4379_v44  ;;  %v1929_v61 = vand.u32 4294901760, %v1928_v48 }
 0x1eb   : > { %v1914_v50 = vsub.f32 %v1738_v41, %v4384_v46  ;;  %v4389_v51 = vand.u32 4294901760, %v1737_v47  ;;  %3789 = vmatprep.subr.mxu0 %v4384_v46  ;;  %v1936_v2 = vand.u32 4294901760, %v1935_v53  ;;  %v1930_v6 = vsub.f32 %v1928_v48, %v1929_v61 }
 0x1ec   : > { %3790 = vmatpush3.msra.mxu0 %v4384_v46 }
 0x1ed   : > { %v1921_v55 = vsub.f32 %v1737_v47, %v4389_v51  ;;  %3791 = vmatprep.subr.mxu0 %v4389_v51  ;;  %v1915_v59 = vand.u32 4294901760, %v1914_v50  ;;  %v1937_v9 = vsub.f32 %v1935_v53, %v1936_v2  ;;  %v1931_v10 = vand.u32 4294901760, %v1930_v6 }
 0x1ee   : > { %3792 = vmatpush3.msra.mxu0 %v4389_v51 }
 0x1ef   : > { %3793 = vmatprep.subr.mxu0 %v4373_v38  ;;  %v1916_v63 = vsub.f32 %v1914_v50, %v1915_v59  ;;  %v1922_v0 = vand.u32 4294901760, %v1921_v55  ;;  %v1938_v11 = vand.u32 4294901760, %v1937_v9 }
 0x1f0   : > { %3794 = vmatpush3.msra.mxu0 %v4373_v38 }
 0x1f1   : > { %3795 = vmatprep.subr.mxu0 %v4379_v44  ;;  %v1917_v3 = vand.u32 4294901760, %v1916_v63  ;;  %v1923_v4 = vsub.f32 %v1921_v55, %v1922_v0 }
 0x1f2   : > { %3796 = vmatpush3.msra.mxu0 %v4379_v44 }
 0x1f3   : > { %3798 = vmatmul.mubr.f32.vlgmr.msra.gmra.mxu0 %v1862_v62  ;;  %3803 = vmatprep.subr.mxu1 %v1917_v3  ;;  %v1924_v7 = vand.u32 4294901760, %v1923_v4 }
 0x1f4   : > { %3817 = vmatprep.subr.mxu0 %v1914_v50  ;;  %3804 = vmatpush3.msra.mxu1 %v1917_v3 }
 0x1f5   : > { %3818 = vmatpush3.msra.mxu0 %v1914_v50  ;;  %3805 = vmatprep.subr.mxu1 %v1924_v7  ;;  %v2399_v50 = vld [vmem:[%s4689_s9 + $0x10] sm:$0xff] }
 0x1f6   : > { %3819 = vmatprep.subr.mxu0 %v1921_v55  ;;  %3800 = vmatprep.mubr.f32.mxu0 %v1872_v5  ;;  %v2446_v63 = vsel %vm1108_vm2, %v2399_v50, 0  ;;  %v2401_v5 = vld [vmem:[%s4689_s9 + $0x20] sm:$0xff] }
 0x1f7   : > { %3806 = vmatpush3.msra.mxu1 %v1924_v7  ;;  %3820 = vmatpush3.msra.mxu0 %v1921_v55 }
 0x1f8   : > { %3801 = vmatmul.mubr.f32.gmra.mxu0 %v1882_v8  ;;  %3807 = vmatprep.subr.mxu1 %v1931_v10  ;;  %v4481_v8 = vand.u32 4294901760, %v2446_v63 }
 0x1f9   : > { %3821 = vmatprep.subr.mxu0 %v1928_v48  ;;  %3808 = vmatpush3.msra.mxu1 %v1931_v10 }
 0x1fa   : > { %3822 = vmatpush3.msra.mxu0 %v1928_v48  ;;  %3809 = vmatprep.subr.mxu1 %v1938_v11 }
 0x1fb   : > { %3823 = vmatprep.subr.mxu0 %v1935_v53  ;;  %3810 = vmatpush3.msra.mxu1 %v1938_v11 }
 0x1fc   : > { %3824 = vmatpush3.msra.mxu0 %v1935_v53  ;;  %3812 = vmatmul.mubr.f32.vlgmr.msra.gmra.mxu1 %v4359_v15 }
 0x1fd   : > { %3825 = vmatprep.mubr.f32.mxu0 %v4345_v34  ;;  %3831 = vmatprep.subr.mxu1 %v4384_v46  ;;  %v2397_v34 = vld [vmem:[%s4689_s9] sm:$0xff] }
 0x1fe   : > { %3845 = vmatprep.subr.mxu0 %v1915_v59  ;;  %3826 = vmatmul.mubr.f32.vlgmr.msra.gmra.mxu0 %v4369_v32 }
 0x1ff   : > { %3832 = vmatpush3.msra.mxu1 %v4384_v46  ;;  %3846 = vmatpush3.msra.mxu0 %v1915_v59  ;;  %v2400_v59 = vld [vmem:[%s4689_s9 + $0x18] sm:$0xff] }
 0x200   : > { %3833 = vmatprep.subr.mxu1 %v4389_v51  ;;  %3847 = vmatprep.subr.mxu0 %v1922_v0  ;;  %v2449_v4 = vsel %vm1108_vm2, %v2400_v59, 0 }
 0x201   : > { %3814 = vmatprep.mubr.f32.mxu1 %v4366_v28  ;;  %3834 = vmatpush3.msra.mxu1 %v4389_v51 }
 0x202   : > { %3848 = vmatpush3.msra.mxu0 %v1922_v0  ;;  %3815 = vmatmul.mubr.f32.gmra.mxu1 %v4371_v58 }
 0x203   : > { %3835 = vmatprep.subr.mxu1 %v4373_v38  ;;  %3849 = vmatprep.subr.mxu0 %v1929_v61 }
 0x204   : > { %3828 = vmatprep.mubr.f32.mxu0 %v4376_v40  ;;  %3836 = vmatpush3.msra.mxu1 %v4373_v38 }
 0x205   : > { %3850 = vmatpush3.msra.mxu0 %v1929_v61  ;;  %3837 = vmatprep.subr.mxu1 %v4379_v44 }
 0x206   : > { %3829 = vmatmul.mubr.f32.gmra.mxu0 %v4382_v45  ;;  %3851 = vmatprep.subr.mxu0 %v1936_v2 }
 0x207   : > { %3838 = vmatpush3.msra.mxu1 %v4379_v44  ;;  %3839 = vmatprep.mubr.f32.mxu1 %v1850_v56  ;;  %v2440_v56 = vsel %vm1108_vm2, %v2397_v34, 0 }
 0x208   : > { %3852 = vmatpush3.msra.mxu0 %v1936_v2  ;;  %3840 = vmatmul.mubr.f32.vlgmr.msra.gmra.mxu1 %v1860_v43  ;;  %v4454_v12 = vand.u32 4294901760, %v2440_v56 }
 0x209   : > { %3859 = vmatprep.subr.mxu1 %v4384_v46  ;;  %3853 = vmatprep.mubr.f32.mxu0 %v4342_v33 }
 0x20a   : > { %3860 = vmatpush3.msra.mxu1 %v4384_v46  ;;  %3854 = vmatmul.mubr.f32.vlgmr.msra.gmra.mxu0 %v4359_v15  ;;  %v4457_v13 = vsub.f32 %v2440_v56, %v4454_v12  ;;  %v2402_v56 = vld [vmem:[%s4689_s9 + $0x28] sm:$0xff] }
 0x20b   : > { %3861 = vmatprep.subr.mxu1 %v4389_v51  ;;  %3842 = vmatprep.mubr.f32.mxu1 %v1870_v49 }
 0x20c   : > { %3862 = vmatpush3.msra.mxu1 %v4389_v51  ;;  %3856 = vmatprep.mubr.f32.mxu0 %v4366_v28 }
 0x20d   : > { %3843 = vmatmul.mubr.f32.gmra.mxu1 %v1880_v54  ;;  %3863 = vmatprep.subr.mxu1 %v4373_v38 }
 0x20e   : > { %3864 = vmatpush3.msra.mxu1 %v4373_v38  ;;  %3857 = vmatmul.mubr.f32.gmra.mxu0 %v4371_v58  ;;  %v2398_v38 = vld [vmem:[%s4689_s9 + $0x8] sm:$0xff] }
 0x20f   : > { %3865 = vmatprep.subr.mxu1 %v4379_v44  ;;  %3867 = vmatprep.mubr.f32.mxu1 %v4342_v33  ;;  %v2528_v33 = vand.u32 4294901760, %v4457_v13  ;;  %v2443_v48 = vsel %vm1108_vm2, %v2398_v38, 0 }
 0x210   : > { %3866 = vmatpush3.msra.mxu1 %v4379_v44  ;;  %v4471_v55 = vand.u32 4294901760, %v2443_v48 }
 0x211   : > { %3868 = vmatmul.mubr.f32.vlgmr.msra.gmra.mxu1 %v4359_v15  ;;  %v2529_v14 = vsub.f32 %v4457_v13, %v2528_v33 }
 0x212   : > { %3870 = vmatprep.mubr.f32.mxu1 %v4366_v28  ;;  %v4484_v34 = vsub.f32 %v2443_v48, %v4471_v55 }
 0x213   : > { %v2530_v15 = vand.u32 4294901760, %v2529_v14 }
 0x215   : > { %3871 = vmatmul.mubr.f32.gmra.mxu1 %v4371_v58  ;;  %3881 = vmatprep.mubr.f32.mxu0 %v2530_v15  ;;  %v4489_v15 = vand.u32 4294901760, %v2449_v4 }
 0x216   : > { %3898 = vmatprep.mubr.f32.mxu1 %v4454_v12 }
 0x2b3   : > { %v3799_v16 = vpop.f32.mrf.mxu0 }
 0x2b4   : > { %v1865_v28 = vadd.f32 %v3799_v16, %v1755_v27  ;;  %v2452_v16 = vsel %vm1108_vm2, %v2401_v5, 0 }
 0x2b5   : > { %v1854_v17 = vpop.f32.mrf.mxu0  ;;  %v4499_v27 = vand.u32 4294901760, %v2452_v16 }
 0x2b6   : > { %v1855_v31 = vadd.f32 %v1854_v17, %v1750_v30 }
 0x2b7   : > { %v4520_v38 = vsub.f32 %v2452_v16, %v4499_v27 }
 0x2b8   : > { %v3802_v18 = vpop.f32.mrf.mxu0 }
 0x2b9   : > { %v1885_v58 = vadd.f32 %v3802_v18, %v1765_v21 }
 0x2ba   : > { %v1874_v19 = vpop.f32.mrf.mxu0 }
 0x2bb   : > { %v1875_v39 = vadd.f32 %v1874_v19, %v1760_v24 }
 0x2bc   : > { %v3813_v20 = vpop.f32.mrf.mxu1 }
 0x2bd   : > { %v1982_v32 = vadd.f32 %v3813_v20, %v1865_v28 }
 0x2be   : > { %v1975_v22 = vpop.f32.mrf.mxu1  ;;  %v3827_v23 = vpop.f32.mrf.mxu0 }
 0x2bf   : > { %v1976_v35 = vadd.f32 %v1975_v22, %v1855_v31  ;;  %v2081_v40 = vadd.f32 %v3827_v23, %v1982_v32  ;;  %v4495_v22 = vsub.f32 %v2446_v63, %v4481_v8  ;;  %v2455_v23 = vsel %vm1108_vm2, %v2402_v56, 0 }
 0x2c0   : > { %v2073_v26 = vpop.f32.mrf.mxu0  ;;  %v4508_v32 = vand.u32 4294901760, %v2455_v23 }
 0x2c1   : > { %v2074_v44 = vadd.f32 %v2073_v26, %v1976_v35  ;;  %v2538_v26 = vand.u32 4294901760, %v4484_v34 }
 0x2c2   : > { %v3816_v25 = vpop.f32.mrf.mxu1 }
 0x2c3   : > { %v1994_v41 = vadd.f32 %v3816_v25, %v1885_v58  ;;  %v2548_v58 = vand.u32 4294901760, %v4495_v22 }
 0x2c4   : > { %v1987_v29 = vpop.f32.mrf.mxu1 }
 0x2c5   : > { %v1988_v45 = vadd.f32 %v1987_v29, %v1875_v39  ;;  %v4504_v29 = vsub.f32 %v2449_v4, %v4489_v15 }
 0x2c6   : > { %v3830_v57 = vpop.f32.mrf.mxu0 }
 0x2c7   : > { %v2095_v51 = vadd.f32 %v3830_v57, %v1994_v41 }
 0x2c8   : > { %v2087_v36 = vpop.f32.mrf.mxu0  ;;  %v3841_v37 = vpop.f32.mrf.mxu1 }
 0x2c9   : > { %v2180_v46 = vadd.f32 %v3841_v37, %v2081_v40  ;;  %v2088_v60 = vadd.f32 %v2087_v36, %v1988_v45  ;;  %v2539_v37 = vsub.f32 %v4484_v34, %v2538_v26  ;;  %v2558_v40 = vand.u32 4294901760, %v4504_v29 }
 0x2ca   : > { %v2171_v42 = vpop.f32.mrf.mxu1  ;;  %v3855_v43 = vpop.f32.mrf.mxu0 }
 0x2cb   : > { %v2172_v52 = vadd.f32 %v2171_v42, %v2074_v44  ;;  %v2285_v61 = vadd.f32 %v3855_v43, %v2180_v46  ;;  %v4528_v43 = vsub.f32 %v2455_v23, %v4508_v32  ;;  %v2549_v44 = vsub.f32 %v4495_v22, %v2548_v58 }
 0x2cc   : > { %v2278_v47 = vpop.f32.mrf.mxu0  ;;  %v2540_v46 = vand.u32 4294901760, %v2539_v37  ;;  %v2559_v50 = vsub.f32 %v4504_v29, %v2558_v40 }
 0x2cd   : > { %v3844_v49 = vpop.f32.mrf.mxu1  ;;  %v2279_v1 = vadd.f32 %v2278_v47, %v2172_v52  ;;  %v2550_v59 = vand.u32 4294901760, %v2549_v44 }
 0x2ce   : > { %v3858_v54 = vpop.f32.mrf.mxu0  ;;  %v2196_v62 = vadd.f32 %v3844_v49, %v2095_v51  ;;  %v2568_v49 = vand.u32 4294901760, %v4520_v38  ;;  %v2560_v63 = vand.u32 4294901760, %v2559_v50 }
 0x2cf   : > { %v2187_v53 = vpop.f32.mrf.mxu1 }
 0x2d0   : > { %v2188_v2 = vadd.f32 %v2187_v53, %v2088_v60  ;;  %v2290_v6 = vpop.f32.mrf.mxu0  ;;  %v2297_v9 = vadd.f32 %v3858_v54, %v2196_v62  ;;  %v2578_v54 = vand.u32 4294901760, %v4528_v43  ;;  %v2569_v62 = vsub.f32 %v4520_v38, %v2568_v49 }
 0x2d1   : > { %v3869_v0 = vpop.f32.mrf.mxu1 }
 0x2d2   : > { %v2378_v3 = vadd.f32 %v3869_v0, %v2285_v61  ;;  %v2291_v17 = vadd.f32 %v2290_v6, %v2188_v2 }
 0x2d3   : > { %v2371_v7 = vpop.f32.mrf.mxu1 }
 0x2d4   : > { %v2394_v10 = vmax.f32 %v2378_v3, 0.0  ;;  %v2372_v11 = vadd.f32 %v2371_v7, %v2279_v1  ;;  %v2579_v1 = vsub.f32 %v4528_v43, %v2578_v54  ;;  %v2570_v3 = vand.u32 4294901760, %v2569_v62 }
 0x2d5   : > { %v3872_v14 = vpop.f32.mrf.mxu1 }
 0x2d6   : > { %v2393_v18 = vmax.f32 %v2372_v11, 0.0  ;;  %v2390_v19 = vadd.f32 %v3872_v14, %v2297_v9  ;;  %v4492_v20 = vand.u32 4294901760, %v2394_v10  ;;  %v2580_v5 = vand.u32 4294901760, %v2579_v1 }
 0x2d7   : > { %v2383_v21 = vpop.f32.mrf.mxu1 }
 0x2d8   : > { %v2396_v24 = vmax.f32 %v2390_v19, 0.0  ;;  %v2384_v25 = vadd.f32 %v2383_v21, %v2291_v17  ;;  %v4501_v28 = vand.u32 4294901760, %v2393_v18  ;;  %v2626_v57 = vsub.f32 %v2394_v10, %v4492_v20  ;;  %v2412_v19 = vpop.permute.xlu0 %2411 }
 0x2da   : > { %v4506_v30 = vand.u32 4294901760, %v2396_v24  ;;  %v2395_v31 = vmax.f32 %v2384_v25, 0.0  ;;  %v2633_v39 = vsub.f32 %v2393_v18, %v4501_v28  ;;  %v4534_v45 = vand.u32 4294901760, %v2626_v57 }
 0x2dc   : > { %v2612_v35 = vsub.f32 %v2396_v24, %v4506_v30  ;;  %v4513_v36 = vand.u32 4294901760, %v2395_v31  ;;  %3873 = vmatprep.subr.mxu0 %v4506_v30  ;;  %v4542_v51 = vand.u32 4294901760, %v2633_v39  ;;  %v2628_v60 = vsub.f32 %v2626_v57, %v4534_v45 }
 0x2dd   : > { %3874 = vmatpush3.msra.mxu0 %v4506_v30 }
 0x2de   : > { %v2619_v41 = vsub.f32 %v2395_v31, %v4513_v36  ;;  %3875 = vmatprep.subr.mxu0 %v4513_v36  ;;  %v2613_v42 = vand.u32 4294901760, %v2612_v35  ;;  %v2635_v0 = vsub.f32 %v2633_v39, %v4542_v51  ;;  %v2629_v2 = vand.u32 4294901760, %v2628_v60 }
 0x2df   : > { %3876 = vmatpush3.msra.mxu0 %v4513_v36 }
 0x2e0   : > { %3877 = vmatprep.subr.mxu0 %v4492_v20  ;;  %v2614_v47 = vsub.f32 %v2612_v35, %v2613_v42  ;;  %v2620_v48 = vand.u32 4294901760, %v2619_v41  ;;  %v2636_v4 = vand.u32 4294901760, %v2635_v0 }
 0x2e1   : > { %3878 = vmatpush3.msra.mxu0 %v4492_v20 }
 0x2e2   : > { %3879 = vmatprep.subr.mxu0 %v4501_v28  ;;  %v2615_v52 = vand.u32 4294901760, %v2614_v47  ;;  %v2621_v53 = vsub.f32 %v2619_v41, %v2620_v48 }
 0x2e3   : > { %3880 = vmatpush3.msra.mxu0 %v4501_v28 }
 0x2e4   : > { %3882 = vmatmul.mubr.f32.vlgmr.msra.gmra.mxu0 %v2540_v46  ;;  %3890 = vmatprep.subr.mxu1 %v2615_v52  ;;  %v2622_v61 = vand.u32 4294901760, %v2621_v53 }
 0x2e5   : > { %3907 = vmatprep.subr.mxu0 %v2612_v35  ;;  %3891 = vmatpush3.msra.mxu1 %v2615_v52 }
 0x2e6   : > { %3908 = vmatpush3.msra.mxu0 %v2612_v35  ;;  %3892 = vmatprep.subr.mxu1 %v2622_v61 }
 0x2e7   : > { %3909 = vmatprep.subr.mxu0 %v2619_v41  ;;  %3884 = vmatprep.mubr.f32.mxu0 %v2550_v59 }
 0x2e8   : > { %3893 = vmatpush3.msra.mxu1 %v2622_v61  ;;  %3910 = vmatpush3.msra.mxu0 %v2619_v41 }
 0x2e9   : > { %3885 = vmatmul.mubr.f32.gmra.mxu0 %v2560_v63  ;;  %3894 = vmatprep.subr.mxu1 %v2629_v2 }
 0x2ea   : > { %3911 = vmatprep.subr.mxu0 %v2626_v57  ;;  %3895 = vmatpush3.msra.mxu1 %v2629_v2 }
 0x2eb   : > { %3912 = vmatpush3.msra.mxu0 %v2626_v57  ;;  %3896 = vmatprep.subr.mxu1 %v2636_v4 }
 0x2ec   : > { %3913 = vmatprep.subr.mxu0 %v2633_v39  ;;  %3887 = vmatprep.mubr.f32.mxu0 %v2570_v3 }
 0x2ed   : > { %3897 = vmatpush3.msra.mxu1 %v2636_v4  ;;  %3914 = vmatpush3.msra.mxu0 %v2633_v39 }
 0x2ee   : > { %3888 = vmatmul.mubr.f32.gmra.mxu0 %v2580_v5  ;;  %3899 = vmatmul.mubr.f32.vlgmr.msra.gmra.mxu1 %v4471_v55 }
 0x2ef   : > { %3924 = vmatprep.subr.mxu1 %v4506_v30  ;;  %3941 = vmatprep.subr.mxu0 %v2613_v42 }
 0x2f0   : > { %3925 = vmatpush3.msra.mxu1 %v4506_v30  ;;  %3901 = vmatprep.mubr.f32.mxu1 %v4481_v8 }
 0x2f1   : > { %3926 = vmatprep.subr.mxu1 %v4513_v36  ;;  %3915 = vmatprep.mubr.f32.mxu0 %v4457_v13 }
 0x2f2   : > { %3927 = vmatpush3.msra.mxu1 %v4513_v36  ;;  %3916 = vmatmul.mubr.f32.vlgmr.msra.gmra.mxu0 %v4484_v34 }
 0x2f3   : > { %3902 = vmatmul.mubr.f32.gmra.mxu1 %v4489_v15  ;;  %3928 = vmatprep.subr.mxu1 %v4492_v20 }
 0x2f4   : > { %3942 = vmatpush3.msra.mxu0 %v2613_v42  ;;  %3929 = vmatpush3.msra.mxu1 %v4492_v20 }
 0x2f5   : > { %3943 = vmatprep.subr.mxu0 %v2620_v48  ;;  %3930 = vmatprep.subr.mxu1 %v4501_v28 }
 0x2f6   : > { %3944 = vmatpush3.msra.mxu0 %v2620_v48  ;;  %3904 = vmatprep.mubr.f32.mxu1 %v4499_v27 }
 0x2f7   : > { %3918 = vmatprep.mubr.f32.mxu0 %v4495_v22  ;;  %3931 = vmatpush3.msra.mxu1 %v4501_v28 }
 0x2f8   : > { %3945 = vmatprep.subr.mxu0 %v4534_v45  ;;  %3905 = vmatmul.mubr.f32.gmra.mxu1 %v4508_v32 }
 0x2f9   : > { %3919 = vmatmul.mubr.f32.gmra.mxu0 %v4504_v29  ;;  %3958 = vmatprep.subr.mxu1 %v4506_v30  ;;  %v2422_v29 = vpop.permute.xlu0 %2421 }
 0x2fa   : > { %3946 = vmatpush3.msra.mxu0 %v4534_v45  ;;  %3921 = vmatprep.mubr.f32.mxu0 %v4520_v38 }
 0x2fb   : > { %3947 = vmatprep.subr.mxu0 %v4542_v51  ;;  %3932 = vmatprep.mubr.f32.mxu1 %v2528_v33 }
 0x2fc   : > { %3948 = vmatpush3.msra.mxu0 %v4542_v51  ;;  %3933 = vmatmul.mubr.f32.vlgmr.msra.gmra.mxu1 %v2538_v26 }
 0x2fd   : > { %3922 = vmatmul.mubr.f32.gmra.mxu0 %v4528_v43  ;;  %3959 = vmatpush3.msra.mxu1 %v4506_v30  ;;  %v2432_v46 = vpop.permute.xlu0 %2431 }
 0x2fe   : > { %3960 = vmatprep.subr.mxu1 %v4513_v36  ;;  %3935 = vmatprep.mubr.f32.mxu1 %v2548_v58 }
 0x2ff   : > { %3961 = vmatpush3.msra.mxu1 %v4513_v36  ;;  %3949 = vmatprep.mubr.f32.mxu0 %v4454_v12 }
 0x300   : > { %3962 = vmatprep.subr.mxu1 %v4492_v20  ;;  %3936 = vmatmul.mubr.f32.gmra.mxu1 %v2558_v40 }
 0x301   : > { %3950 = vmatmul.mubr.f32.vlgmr.msra.gmra.mxu0 %v4471_v55  ;;  %3963 = vmatpush3.msra.mxu1 %v4492_v20 }
 0x302   : > { %3964 = vmatprep.subr.mxu1 %v4501_v28  ;;  %3938 = vmatprep.mubr.f32.mxu1 %v2568_v49 }
 0x303   : > { %3965 = vmatpush3.msra.mxu1 %v4501_v28  ;;  %3952 = vmatprep.mubr.f32.mxu0 %v4481_v8 }
 0x304   : > { %3939 = vmatmul.mubr.f32.gmra.mxu1 %v2578_v54 }
 0x305   : > { %3953 = vmatmul.mubr.f32.gmra.mxu0 %v4489_v15  ;;  %3966 = vmatprep.mubr.f32.mxu1 %v4454_v12 }
 0x306   : > { %3955 = vmatprep.mubr.f32.mxu0 %v4499_v27 }
 0x308   : > { %3967 = vmatmul.mubr.f32.vlgmr.msra.gmra.mxu1 %v4471_v55 }
 0x309   : > { %3956 = vmatmul.mubr.f32.gmra.mxu0 %v4508_v32  ;;  %3969 = vmatprep.mubr.f32.mxu1 %v4481_v8 }
 0x30c   : > { %3970 = vmatmul.mubr.f32.gmra.mxu1 %v4489_v15  ;;  %v2417_v15 = vpop.permute.xlu1 %2416 }
 0x30d   : > { %3972 = vmatprep.mubr.f32.mxu1 %v4499_v27 }
 0x310   : > { %3973 = vmatmul.mubr.f32.gmra.mxu1 %v4508_v32  ;;  %v2427_v25 = vpop.permute.xlu1 %2426 }
 0x314   : > { %v2437_v42 = vpop.permute.xlu1 %2436 }
 0x3a4   : > { %v3883_v13 = vpop.f32.mrf.mxu0 }
 0x3a5   : > { %v2543_v26 = vadd.f32 %v3883_v13, %v2417_v15 }
 0x3a6   : > { %v2532_v33 = vpop.f32.mrf.mxu0 }
 0x3a7   : > { %v2533_v27 = vadd.f32 %v2532_v33, %v2412_v19  ;;  %v3447_v33 = vld [vmem:[%s4614_s25] ss:$0 sm:$0xff]  ;;  %v3449_v19 = vld [vmem:[%s4614_s25 + $0x2] ss:$0 sm:$0xff] }
 0x3a9   : > { %v3886_v6 = vpop.f32.mrf.mxu0 }
 0x3aa   : > { %v2563_v58 = vadd.f32 %v3886_v6, %v2427_v25 }
 0x3ab   : > { %v2552_v7 = vpop.f32.mrf.mxu0 }
 0x3ac   : > { %v2553_v39 = vadd.f32 %v2552_v7, %v2422_v29  ;;  %v3448_v7 = vld [vmem:[%s4614_s25 + $0x1] ss:$0 sm:$0xff] }
 0x3ae   : > { %v3889_v9 = vpop.f32.mrf.mxu0  ;;  %v3900_v12 = vpop.f32.mrf.mxu1 }
 0x3af   : > { %v2680_v31 = vadd.f32 %v3900_v12, %v2543_v26  ;;  %v2583_v47 = vadd.f32 %v3889_v9, %v2437_v42 }
 0x3b0   : > { %v2572_v10 = vpop.f32.mrf.mxu0  ;;  %v2673_v11 = vpop.f32.mrf.mxu1 }
 0x3b1   : > { %v2674_v32 = vadd.f32 %v2673_v11, %v2533_v27  ;;  %v2573_v51 = vadd.f32 %v2572_v10, %v2432_v46 }
 0x3b2   : > { %v3917_v34 = vpop.f32.mrf.mxu0 }
 0x3b3   : > { %v3903_v55 = vpop.f32.mrf.mxu1  ;;  %v2791_v36 = vadd.f32 %v3917_v34, %v2680_v31 }
 0x3b4   : > { %v2783_v14 = vpop.f32.mrf.mxu0  ;;  %v2692_v40 = vadd.f32 %v3903_v55, %v2563_v58 }
 0x3b5   : > { %v2685_v56 = vpop.f32.mrf.mxu1  ;;  %v2784_v37 = vadd.f32 %v2783_v14, %v2674_v32 }
 0x3b6   : > { %v2686_v48 = vadd.f32 %v2685_v56, %v2553_v39 }
 0x3b8   : > { %v3906_v16 = vpop.f32.mrf.mxu1 }
 0x3b9   : > { %v3920_v8 = vpop.f32.mrf.mxu0  ;;  %v2704_v54 = vadd.f32 %v3906_v16, %v2583_v47 }
 0x3ba   : > { %v2697_v17 = vpop.f32.mrf.mxu1  ;;  %v2805_v49 = vadd.f32 %v3920_v8, %v2692_v40 }
 0x3bb   : > { %v2797_v18 = vpop.f32.mrf.mxu0  ;;  %v2698_v63 = vadd.f32 %v2697_v17, %v2573_v51 }
 0x3bc   : > { %v3934_v20 = vpop.f32.mrf.mxu1  ;;  %v2798_v59 = vadd.f32 %v2797_v18, %v2686_v48 }
 0x3bd   : > { %v3923_v21 = vpop.f32.mrf.mxu0  ;;  %v2904_v43 = vadd.f32 %v3934_v20, %v2791_v36 }
 0x3be   : > { %v2895_v22 = vpop.f32.mrf.mxu1  ;;  %v2819_v2 = vadd.f32 %v3923_v21, %v2704_v54 }
 0x3bf   : > { %v2811_v23 = vpop.f32.mrf.mxu0  ;;  %v2896_v44 = vadd.f32 %v2895_v22, %v2784_v37  ;;  %v3453_v37 = vld [vmem:[%s4614_s25 + $0x6] ss:$0 sm:$0xff] }
 0x3c0   : > { %v3937_v24 = vpop.f32.mrf.mxu1  ;;  %v2812_v13 = vadd.f32 %v2811_v23, %v2698_v63 }
 0x3c1   : > { %v3951_v28 = vpop.f32.mrf.mxu0  ;;  %v2920_v60 = vadd.f32 %v3937_v24, %v2805_v49  ;;  %v3450_v24 = vld [vmem:[%s4614_s25 + $0x3] ss:$0 sm:$0xff]  ;;  %v3456_v49 = vld [vmem:[%s4614_s25 + $0x9] ss:$0 sm:$0xff] }
 0x3c2   : > { %v2911_v30 = vpop.f32.mrf.mxu1  ;;  %v3025_v52 = vadd.f32 %v3951_v28, %v2904_v43  ;;  %v3451_v28 = vld [vmem:[%s4614_s25 + $0x4] ss:$0 sm:$0xff] }
 0x3c3   : > { %v3018_v57 = vpop.f32.mrf.mxu0  ;;  %v2912_v3 = vadd.f32 %v2911_v30, %v2798_v59 }
 0x3c4   : > { %v3940_v35 = vpop.f32.mrf.mxu1  ;;  %v3019_v53 = vadd.f32 %v3018_v57, %v2896_v44  ;;  %v3452_v57 = vld [vmem:[%s4614_s25 + $0x5] ss:$0 sm:$0xff] }
 0x3c5   : > { %v3954_v38 = vpop.f32.mrf.mxu0  ;;  %v2936_v12 = vadd.f32 %v3940_v35, %v2819_v2  ;;  %v3459_v2 = vld [vmem:[%s4614_s25 + $0xc] ss:$0 sm:$0xff] }
 0x3c6   : > { %v2927_v41 = vpop.f32.mrf.mxu1  ;;  %v3037_v4 = vadd.f32 %v3954_v38, %v2920_v60 }
 0x3c7   : > { %v3030_v45 = vpop.f32.mrf.mxu0  ;;  %v2928_v56 = vadd.f32 %v2927_v41, %v2812_v13  ;;  %v3454_v41 = vld [vmem:[%s4614_s25 + $0x7] ss:$0 sm:$0xff]  ;;  %v3460_v13 = vld [vmem:[%s4614_s25 + $0xd] ss:$0 sm:$0xff] }
 0x3c8   : > { %v3968_v50 = vpop.f32.mrf.mxu1  ;;  %v3031_v10 = vadd.f32 %v3030_v45, %v2912_v3  ;;  %v3455_v45 = vld [vmem:[%s4614_s25 + $0x8] ss:$0 sm:$0xff] }
 0x3c9   : > { %v3957_v61 = vpop.f32.mrf.mxu0  ;;  %v3130_v0 = vadd.f32 %v3968_v50, %v3025_v52 }
 0x3ca   : > { %v3123_v62 = vpop.f32.mrf.mxu1  ;;  %v3049_v14 = vadd.f32 %v3957_v61, %v2936_v12  ;;  %v3458_v61 = vld [vmem:[%s4614_s25 + $0xb] ss:$0 sm:$0xff] }
 0x3cb   : > { %v3124_v1 = vadd.f32 %v3123_v62, %v3019_v53  ;;  %v3042_v11 = vpop.f32.mrf.mxu0  ;;  %v3205_v35 = vmul.f32 %v3130_v0, %v3130_v0  ;;  %v3457_v53 = vld [vmem:[%s4614_s25 + $0xa] ss:$0 sm:$0xff] }
 0x3cc   : > { %v3971_v5 = vpop.f32.mrf.mxu1  ;;  %v3043_v18 = vadd.f32 %v3042_v11, %v2928_v56  ;;  %v3462_v11 = vld [vmem:[%s4614_s25 + $0xf] ss:$0 sm:$0xff] }
 0x3cd   : > { %v3158_v6 = vmul.f32 %v3124_v1, %v3124_v1  ;;  %v3165_v9 = vmul.f32 %v3130_v0, %v3124_v1  ;;  %v4618_v34 = vadd.f32 %v3971_v5, %v3037_v4  ;;  %v3210_v42 = vmul.f32 %v3453_v37, %v3205_v35 }
 0x3ce   : > { %v3135_v55 = vpop.f32.mrf.mxu1 }
 0x3cf   : > { %v3163_v16 = vmul.f32 %v3447_v33, %v3158_v6  ;;  %v3170_v8 = vmul.f32 %v3448_v7, %v3165_v9  ;;  %v3136_v17 = vadd.f32 %v3135_v55, %v3031_v10  ;;  %v3181_v20 = vmul.f32 %v4618_v34, %v3124_v1  ;;  %v3461_v7 = vld [vmem:[%s4614_s25 + $0xe] ss:$0 sm:$0xff] }
 0x3d0   : > { %v3974_v15 = vpop.f32.mrf.mxu1  ;;  %v3221_v43 = vmul.f32 %v4618_v34, %v3130_v0  ;;  %v3277_v10 = vmul.f32 %v4618_v34, %v4618_v34 }
 0x3d1   : > { %v3173_v21 = vmul.f32 %v3136_v17, %v3124_v1  ;;  %v4622_v22 = vadd.f32 %v3974_v15, %v3049_v14  ;;  %v3171_v26 = vadd.f32 %v3170_v8, %v3163_v16  ;;  %v3186_v30 = vmul.f32 %v3450_v24, %v3181_v20  ;;  %v3463_v16 = vld [vmem:[%s4614_s25 + $0x10] ss:$0 sm:$0xff] }
 0x3d2   : > { %v3147_v23 = vpop.f32.mrf.mxu1  ;;  %v3213_v38 = vmul.f32 %v3136_v17, %v3130_v0  ;;  %v3226_v50 = vmul.f32 %v3455_v45, %v3221_v43  ;;  %v3245_v54 = vmul.f32 %v3136_v17, %v3136_v17  ;;  %v3253_v62 = vmul.f32 %v4618_v34, %v3136_v17 }
 0x3d3   : > { %v4625_v25 = vadd.f32 %v3147_v23, %v3043_v18  ;;  %v3178_v27 = vmul.f32 %v3449_v19, %v3173_v21  ;;  %v3197_v32 = vmul.f32 %v4622_v22, %v3124_v1  ;;  %v3237_v51 = vmul.f32 %v4622_v22, %v3130_v0  ;;  %v3464_v18 = vld [vmem:[%s4614_s25 + $0x11] ss:$0 sm:$0xff]  ;;  %v3465_v23 = vld [vmem:[%s4614_s25 + $0x12] ss:$0 sm:$0xff] }
 0x3d4   : > { %v3218_v46 = vmul.f32 %v3454_v41, %v3213_v38  ;;  %v3250_v3 = vmul.f32 %v3458_v61, %v3245_v54  ;;  %v3269_v33 = vmul.f32 %v4622_v22, %v3136_v17  ;;  %v3282_v15 = vmul.f32 %v3462_v11, %v3277_v10 }
 0x3d5   : > { %v3189_v29 = vmul.f32 %v4625_v25, %v3124_v1  ;;  %v3179_v31 = vadd.f32 %v3178_v27, %v3171_v26  ;;  %v3202_v39 = vmul.f32 %v3452_v57, %v3197_v32  ;;  %v3229_v48 = vmul.f32 %v4625_v25, %v3130_v0 }
 0x3d6   : > { %v3242_v63 = vmul.f32 %v3457_v53, %v3237_v51  ;;  %v3261_v4 = vmul.f32 %v4625_v25, %v3136_v17  ;;  %v3258_v0 = vmul.f32 %v3459_v2, %v3253_v62  ;;  %v3274_v56 = vmul.f32 %v3461_v7, %v3269_v33 }
 0x3d7   : > { %v3194_v58 = vmul.f32 %v3451_v28, %v3189_v29  ;;  %v3187_v36 = vadd.f32 %v3186_v30, %v3179_v31  ;;  %v3234_v60 = vmul.f32 %v3456_v49, %v3229_v48  ;;  %v3285_v14 = vmul.f32 %v4625_v25, %v4618_v34  ;;  %v3466_v28 = vld [vmem:[%s4614_s25 + $0x13] ss:$0 sm:$0xff] }
 0x3d8   : > { %v3266_v12 = vmul.f32 %v3460_v13, %v3261_v4  ;;  %v3293_v17 = vmul.f32 %v4622_v22, %v4618_v34  ;;  %v3301_v21 = vmul.f32 %v4625_v25, %v4625_v25  ;;  %v3309_v27 = vmul.f32 %v4622_v22, %v4625_v25  ;;  %v3467_v34 = vld [vmem:[%s4614_s25 + $0x14] ss:$0 sm:$0xff] }
 0x3d9   : > { %v3195_v40 = vadd.f32 %v3194_v58, %v3187_v36  ;;  %v3290_v20 = vmul.f32 %v3463_v16, %v3285_v14  ;;  %v3317_v31 = vmul.f32 %v4622_v22, %v4622_v22  ;;  %v3468_v36 = vld [vmem:[%s4682_s2] ss:$0 sm:$0xff] }
 0x3da   : > { %v3298_v26 = vmul.f32 %v3464_v18, %v3293_v17  ;;  %v3306_v30 = vmul.f32 %v3465_v23, %v3301_v21  ;;  %v3314_v57 = vmul.f32 %v3466_v28, %v3309_v27 }
 0x3db   : > { %v3203_v44 = vadd.f32 %v3202_v39, %v3195_v40  ;;  %v3322_v35 = vmul.f32 %v3467_v34, %v3317_v31 }
 0x3dd   : > { %v3211_v47 = vadd.f32 %v3210_v42, %v3203_v44 }
 0x3df   : > { %v3219_v52 = vadd.f32 %v3218_v46, %v3211_v47 }
 0x3e1   : > { %v3227_v59 = vadd.f32 %v3226_v50, %v3219_v52 }
 0x3e3   : > { %v3235_v1 = vadd.f32 %v3234_v60, %v3227_v59 }
 0x3e5   : > { %v3243_v5 = vadd.f32 %v3242_v63, %v3235_v1 }
 0x3e7   : > { %v3251_v6 = vadd.f32 %v3250_v3, %v3243_v5 }
 0x3e9   : > { %v3259_v9 = vadd.f32 %v3258_v0, %v3251_v6 }
 0x3eb   : > { %v3267_v55 = vadd.f32 %v3266_v12, %v3259_v9 }
 0x3ed   : > { %v3275_v8 = vadd.f32 %v3274_v56, %v3267_v55 }
 0x3ef   : > { %v3283_v19 = vadd.f32 %v3282_v15, %v3275_v8 }
 0x3f1   : > { %v3291_v24 = vadd.f32 %v3290_v20, %v3283_v19 }
 0x3f3   : > { %v3299_v29 = vadd.f32 %v3298_v26, %v3291_v24 }
 0x3f5   : > { %v3307_v32 = vadd.f32 %v3306_v30, %v3299_v29 }
 0x3f7   : > { %v3315_v58 = vadd.f32 %v3314_v57, %v3307_v32 }
 0x3f9   : > { %v3323_v37 = vadd.f32 %v3322_v35, %v3315_v58 }
 0x3fb   : > { %v3332_v38 = vmul.f32 %v3468_v36, %v3323_v37 }
 0x3fd   : > { %3339 = vadd.xlane.f32.xlu0 %v3332_v38 }
 0x486   : > { %v3340_v25 = vpop.xlane.xlu0 %3339 }
 0x487   : > { %3342 = vst.msk [vmem:[%s449_s12] sm:$0xff] %vm3341_vm3, %v3340_v25 }
 0x488 PF: > { %s21_s19 = sadd.s32 1, %s4025_s19   ;;  %s4692_s17 = smov %s4021_s18 }
 0x489   : > { %p18_p5 = scmp.ge.s32.totalorder %s21_s19, 4   ;;  %s4693_s18 = smov %s4695_s20 }
 0x48b   :  { %20 = sbr.rel (!%p18_p5) target bundleno = 2 (0x2), region = 108 }

</bundles_post_ra>
